<compile_context>
chip_gen: v7x
topology: tpu7x:2x2x1
jax: 0.10.0
libtpu: 0.0.40
codegen_flags: <defaults>
</compile_context>

<pallas_src>
import jax
import jax.numpy as jnp
from jax import lax
from jax.experimental import pallas as pl
from jax.experimental.pallas import tpu as pltpu


def _full_spec(shape):
    n = len(shape)
    return pl.BlockSpec(tuple(shape), lambda i, _n=n: (0,) * _n)


def _unroll_for(n):
    # Full unroll keeps LLO scheduling visibility on short recurrences; cap it
    # for long sequences to avoid vreg-spill / compile-time blowup.
    return True if n <= 16 else 8


def _gru_cell(h, gi, whh, bhh_b, H):
    """PyTorch-ordered GRU cell ([r, z, n]); bf16 MXU matmul, f32 accum."""
    gh = jnp.dot(h.astype(whh.dtype), whh,
                 preferred_element_type=jnp.float32) + bhh_b
    r = jax.nn.sigmoid(gi[:, :H] + gh[:, :H])
    z = jax.nn.sigmoid(gi[:, H:2 * H] + gh[:, H:2 * H])
    n = jnp.tanh(gi[:, 2 * H:] + r * gh[:, 2 * H:])
    return (1.0 - z) * n + z * h


# --------------------- fused dual-encoder (GRU) kernel -----------------------

def _dual_gru_encoder_kernel(xc_ref, xa_ref,
                             wih_c_ref, whh_c_ref, bih_c_ref, bhh_c_ref,
                             wih_a_ref, whh_a_ref, bih_a_ref, bhh_a_ref,
                             c_hs_ref, a_fin_ref,
                             gic_ref, gia_ref):
    Tc, B, H = c_hs_ref.shape
    Ta = gia_ref.shape[0]

    # Hoisted weight loads / bias broadcasts (done once, outside the loops).
    whh_c = whh_c_ref[...]
    whh_a = whh_a_ref[...]
    bhh_c_b = jnp.broadcast_to(bhh_c_ref[...], (B, 3 * H))
    bhh_a_b = jnp.broadcast_to(bhh_a_ref[...], (B, 3 * H))

    # Phase 1: every timestep's input projection in ONE bf16 MXU matmul each,
    # then scattered into tile-aligned (T, B, 3H) scratch.
    gic = jnp.dot(xc_ref[...], wih_c_ref[...],
                  preferred_element_type=jnp.float32) + bih_c_ref[...]
    gia = jnp.dot(xa_ref[...], wih_a_ref[...],
                  preferred_element_type=jnp.float32) + bih_a_ref[...]
    for t in range(Tc):                       # static offsets, off critical path
        gic_ref[t] = gic[t * B:(t + 1) * B, :]
    for t in range(Ta):
        gia_ref[t] = gia[t * B:(t + 1) * B, :]

    # Phase 2: the two independent recurrences, INTERLEAVED so the second
    # chain's MXU/EUP work fills the first chain's serial-latency bubbles.
    h0 = jnp.zeros((B, H), jnp.float32)
    Tmin = min(Tc, Ta)

    def both_step(t, carry):
        hc, ha = carry
        hc = _gru_cell(hc, gic_ref[t], whh_c, bhh_c_b, H)
        ha = _gru_cell(ha, gia_ref[t], whh_a, bhh_a_b, H)
        c_hs_ref[t] = hc.astype(c_hs_ref.dtype)
        return (hc, ha)

    hc, ha = lax.fori_loop(0, Tmin, both_step, (h0, h0),
                           unroll=_unroll_for(max(Tmin, 1)))

    if Tc > Tmin:                                   # tail (static trip count)
        def c_step(t, hc):
            hc = _gru_cell(hc, gic_ref[t], whh_c, bhh_c_b, H)
            c_hs_ref[t] = hc.astype(c_hs_ref.dtype)
            return hc
        hc = lax.fori_loop(Tmin, Tc, c_step, hc, unroll=_unroll_for(Tc - Tmin))

    if Ta > Tmin:
        def a_step(t, ha):
            return _gru_cell(ha, gia_ref[t], whh_a, bhh_a_b, H)
        ha = lax.fori_loop(Tmin, Ta, a_step, ha, unroll=_unroll_for(Ta - Tmin))

    a_fin_ref[...] = ha.astype(a_fin_ref.dtype)


def dual_gru_encoder(xc2d, xa2d, pc, pa, Tc, Ta, B, H):
    """xc2d/xa2d: (T*B, E) bf16 stacked encoder inputs.  Returns
    (c_hiddens (Tc,B,H) bf16, a_final (B,H) bf16)."""
    E = xc2d.shape[-1]
    return pl.pallas_call(
        _dual_gru_encoder_kernel,
        out_shape=(jax.ShapeDtypeStruct((Tc, B, H), jnp.bfloat16),
                   jax.ShapeDtypeStruct((B, H), jnp.bfloat16)),
        grid_spec=pltpu.PrefetchScalarGridSpec(
            num_scalar_prefetch=0,
            grid=(1,),
            in_specs=[
                _full_spec((Tc * B, E)),
                _full_spec((Ta * B, E)),
                _full_spec((E, 3 * H)),
                _full_spec((H, 3 * H)),
                _full_spec((1, 3 * H)),
                _full_spec((1, 3 * H)),
                _full_spec((E, 3 * H)),
                _full_spec((H, 3 * H)),
                _full_spec((1, 3 * H)),
                _full_spec((1, 3 * H)),
            ],
            out_specs=[_full_spec((Tc, B, H)), _full_spec((B, H))],
            scratch_shapes=[pltpu.VMEM((Tc, B, 3 * H), jnp.float32),
                            pltpu.VMEM((Ta, B, 3 * H), jnp.float32)],
        ),
        compiler_params=pltpu.CompilerParams(
            dimension_semantics=("arbitrary",),
            vmem_limit_bytes=32 * 1024 * 1024),
    )(xc2d, xa2d, pc["wih"], pc["whh"], pc["bih"], pc["bhh"],
      pa["wih"], pa["whh"], pa["bih"], pa["bhh"])


# ------------------- attention-GRU decoder (recurrent part) ------------------

def _attn_decoder_rnn_kernel(emb_ref, enc_ref, wat_ref, wih_e_ref, wih_c_ref,
                             whh_ref, bih_ref, bhh_ref,
                             h_all_ref, ctx_all_ref,
                             gi_ref, enca_ref):
    Tq, B, H = h_all_ref.shape
    S = enc_ref.shape[0]

    # Hoisted weight loads / bias broadcast.
    whh = whh_ref[...]
    wih_c = wih_c_ref[...]
    wat = wat_ref[...]
    bhh_b = jnp.broadcast_to(bhh_ref[...], (B, 3 * H))

    # Phase 1a: teacher-forced embedding projections in ONE bf16 MXU matmul,
    # scattered into tile-aligned (Tq, B, 3H) scratch.
    gi2d = jnp.dot(emb_ref[...], wih_e_ref[...],
                   preferred_element_type=jnp.float32) + bih_ref[...]
    for t in range(Tq):
        gi_ref[t] = gi2d[t * B:(t + 1) * B, :]

    # Phase 1b: hoist Wa off the serial path: encA[s] = enc[s] @ Wa^T, so the
    # per-step score is a pure VPU multiply + lane reduce.
    for s in range(S):
        enca_ref[s] = jnp.dot(enc_ref[s], wat,
                              preferred_element_type=jnp.float32)

    enc_f32 = enc_ref[...].astype(jnp.float32)      # (S, B, H), loaded once
    enca = enca_ref[...]                            # (S, B, H) f32

    # Phase 2: recurrence.  Only ctx@W_ih_c and h@W_hh remain on the chain.
    def step(t, h):
        # Attention on VPU/XLU/EUP — no MXU push/pop on the serial chain.
        sc = jnp.sum(h[None, :, :] * enca, axis=-1, keepdims=True)   # (S,B,1)
        sc = sc - jnp.max(sc, axis=0, keepdims=True)
        e = jnp.exp(sc)
        w = e * pl.reciprocal(jnp.sum(e, axis=0, keepdims=True), approx=True)
        ctx = jnp.sum(w * enc_f32, axis=0)                            # (B, H)

        # GRU cell on [embedding, context] via split weights (no lane concat).
        gi = gi_ref[t] + jnp.dot(ctx.astype(wih_c.dtype), wih_c,
                                 preferred_element_type=jnp.float32)
        h_new = _gru_cell(h, gi, whh, bhh_b, H)

        h_all_ref[t] = h_new.astype(h_all_ref.dtype)
        ctx_all_ref[t] = ctx.astype(ctx_all_ref.dtype)
        return h_new

    # TODO(synk): decoder hidden init is zeros; if the real module initializes
    # from an encoder final hidden, seed this carry from it instead.
    h0 = jnp.zeros((B, H), jnp.float32)
    lax.fori_loop(0, Tq, step, h0, unroll=_unroll_for(Tq))


def attn_decoder_rnn(emb2d, enc, wat, p, Tq, B):
    """emb2d: (Tq*B, E) bf16 teacher-forced embeddings; enc: (S, B, H) bf16
    encoder hidden states (encoder-native layout, no host transpose);
    wat: Wa^T (H, H) bf16.  Returns (h_all, ctx_all), each (Tq, B, H) bf16."""
    TB, E = emb2d.shape
    S, _, H = enc.shape
    return pl.pallas_call(
        _attn_decoder_rnn_kernel,
        out_shape=(jax.ShapeDtypeStruct((Tq, B, H), jnp.bfloat16),
                   jax.ShapeDtypeStruct((Tq, B, H), jnp.bfloat16)),
        grid_spec=pltpu.PrefetchScalarGridSpec(
            num_scalar_prefetch=0,
            grid=(1,),
            in_specs=[
                _full_spec((TB, E)),
                _full_spec((S, B, H)),
                _full_spec((H, H)),
                _full_spec((E, 3 * H)),
                _full_spec((H, 3 * H)),
                _full_spec((H, 3 * H)),
                _full_spec((1, 3 * H)),
                _full_spec((1, 3 * H)),
            ],
            out_specs=[_full_spec((Tq, B, H)), _full_spec((Tq, B, H))],
            scratch_shapes=[pltpu.VMEM((Tq, B, 3 * H), jnp.float32),
                            pltpu.VMEM((S, B, H), jnp.float32)],
        ),
        compiler_params=pltpu.CompilerParams(
            dimension_semantics=("arbitrary",),
            vmem_limit_bytes=32 * 1024 * 1024),
    )(emb2d, enc, wat, p["wih_e"], p["wih_c"], p["whh"], p["bih"], p["bhh"])


# ---------------- vocab projection + log_softmax (batched epilogue) ----------

def _vocab_proj_kernel(h2_ref, c2_ref, wout_h_ref, wout_c_ref, bout_ref,
                       out_ref):
    logits = (jnp.dot(h2_ref[...], wout_h_ref[...],
                      preferred_element_type=jnp.float32)
              + jnp.dot(c2_ref[...], wout_c_ref[...],
                        preferred_element_type=jnp.float32)
              + bout_ref[...])
    m = jnp.max(logits, axis=-1, keepdims=True)
    sh = logits - m
    lse = jnp.log(jnp.sum(jnp.exp(sh), axis=-1, keepdims=True))
    out_ref[...] = sh - lse


def vocab_projection(h2d, c2d, wout_h, wout_c, bout):
    """(Tq*B, H) bf16 x2 -> (Tq*B, V) f32 log-probs: one lane-dense bf16
    matmul pair + numerically-stable log_softmax.
    TODO(synk): tile over V (two-pass log-softmax) at real vocabulary sizes."""
    R, H = h2d.shape
    V = bout.shape[-1]
    return pl.pallas_call(
        _vocab_proj_kernel,
        out_shape=jax.ShapeDtypeStruct((R, V), jnp.float32),
        grid_spec=pltpu.PrefetchScalarGridSpec(
            num_scalar_prefetch=0,
            grid=(1,),
            in_specs=[_full_spec((R, H)), _full_spec((R, H)),
                      _full_spec((H, V)), _full_spec((H, V)),
                      _full_spec((1, V))],
            out_specs=_full_spec((R, V)),
            scratch_shapes=[],
        ),
        compiler_params=pltpu.CompilerParams(
            dimension_semantics=("arbitrary",),
            vmem_limit_bytes=32 * 1024 * 1024),
    )(h2d, c2d, wout_h, wout_c, bout)


# ------------------------------- module glue ---------------------------------

def init_params(key, E, H, V):
    ks = jax.random.split(key, 12)
    s = 0.1
    bf = jnp.bfloat16

    def gru(k, in_dim):
        ka, kb, kc, kd = jax.random.split(k, 4)
        return {
            "wih": (s * jax.random.normal(ka, (in_dim, 3 * H), jnp.float32)).astype(bf),
            "whh": (s * jax.random.normal(kb, (H, 3 * H), jnp.float32)).astype(bf),
            "bih": s * jax.random.normal(kc, (1, 3 * H), jnp.float32),
            "bhh": s * jax.random.normal(kd, (1, 3 * H), jnp.float32),
        }

    params = {
        "c_enc": gru(ks[0], E),
        "a_enc": gru(ks[1], E),
        "dec": {
            # decoder GRU input weight split into embedding / context halves
            "wih_e": (s * jax.random.normal(ks[2], (E, 3 * H), jnp.float32)).astype(bf),
            "wih_c": (s * jax.random.normal(ks[3], (H, 3 * H), jnp.float32)).astype(bf),
            "whh": (s * jax.random.normal(ks[4], (H, 3 * H), jnp.float32)).astype(bf),
            "bih": s * jax.random.normal(ks[5], (1, 3 * H), jnp.float32),
            "bhh": s * jax.random.normal(ks[6], (1, 3 * H), jnp.float32),
            "wa": (s * jax.random.normal(ks[7], (H, H), jnp.float32)).astype(bf),
            # output Linear(2H, V) split into hidden / context halves
            "wout_h": (s * jax.random.normal(ks[8], (H, V), jnp.float32)).astype(bf),
            "wout_c": (s * jax.random.normal(ks[9], (H, V), jnp.float32)).astype(bf),
            "bout": s * jax.random.normal(ks[10], (1, V), jnp.float32),
        },
    }
    return params


def g_forward(params, inputs0, inputs1_tokens, inputs2, emb_table, sos_idx,
              max_q_len):
    """Teacher-forcing forward of G.

    inputs0: (Tc, B, E) context embedding sequence   (inputs[0])
    inputs1_tokens: (max_q_len, B) int32 ground-truth question tokens (inputs[1])
    inputs2: (Ta, B, E) answer embedding sequence    (inputs[2])
    returns all_decoder_outputs: (max_q_len, B, output_size) log-probs.
    """
    Tc, B, E = inputs0.shape
    Ta = inputs2.shape[0]
    H = params["c_enc"]["whh"].shape[0]

    xc = inputs0.reshape(Tc * B, E).astype(jnp.bfloat16)
    xa = inputs2.reshape(Ta * B, E).astype(jnp.bfloat16)

    # Fused dual-encoder: both GRU chains interleaved in one kernel.  The
    # answer encoder still runs (as in the module) but only its final hidden
    # is written back — the teacher-forcing decoder attends over the context
    # encoder hidden states only.
    c_hiddens, a_final = dual_gru_encoder(
        xc, xa, params["c_enc"], params["a_enc"], Tc, Ta, B, H)
    del a_final  # TODO(synk): wire in if the real AttnDecoderRNN consumes it.

    # Teacher forcing: step 0 input is SOS, step di>0 is the embedding of the
    # ground-truth token inputs[1][di-1].
    sos = jnp.broadcast_to(emb_table[sos_idx][None, None, :], (1, B, E))
    tf_embs = emb_table[inputs1_tokens[:max_q_len - 1]]        # (Tq-1, B, E)
    emb_seq = jnp.concatenate([sos, tf_embs], axis=0).astype(jnp.bfloat16)

    dec = params["dec"]
    h_all, ctx_all = attn_decoder_rnn(emb_seq.reshape(max_q_len * B, E),
                                      c_hiddens, dec["wa"].T, dec,
                                      max_q_len, B)
    logp = vocab_projection(h_all.reshape(max_q_len * B, H),
                            ctx_all.reshape(max_q_len * B, H),
                            dec["wout_h"], dec["wout_c"], dec["bout"])
    V = dec["bout"].shape[-1]
    return logp.reshape(max_q_len, B, V)


if __name__ == "__main__":
    # Small deterministic configuration (n_layers=1, num_directions=1).
    B = 2            # batch_size
    E = 32           # enc_input_size == dec_input_size == embeddings_size
    H = 32           # enc_hidden_size == dec_hidden_size
    V = 128          # output_size (vocab) — lane-dense output width
    Tc, Ta = 8, 8    # context / answer sequence lengths
    MAX_Q = 6        # max_q_len
    SOS = 1

    key = jax.random.PRNGKey(0)
    k_par, k_emb, k_c, k_a, k_tok = jax.random.split(key, 5)

    params = init_params(k_par, E, H, V)
    emb_table = 0.1 * jax.random.normal(k_emb, (V, E), jnp.float32)
    inputs0 = jax.random.normal(k_c, (Tc, B, E), jnp.float32)         # context embeddings
    inputs2 = jax.random.normal(k_a, (Ta, B, E), jnp.float32)         # answer embeddings
    inputs1 = jax.random.randint(k_tok, (MAX_Q, B), 0, V, jnp.int32)  # gt question tokens

    out = g_forward(params, inputs0, inputs1, inputs2, emb_table, SOS, MAX_Q)
    out = jax.block_until_ready(out)
    assert out.shape == (MAX_Q, B, V)
    assert bool(jnp.all(jnp.isfinite(out)))
    print("KERNEL_OK")
</pallas_src>

<mosaic_0001>
module attributes {stable_mosaic.version = 11 : i64} {
  func.func @_dual_gru_encoder_kernel(%arg0: i32, %arg1: memref<16x32xbf16, #tpu.memory_space<vmem>>, %arg2: memref<16x32xbf16, #tpu.memory_space<vmem>>, %arg3: memref<32x96xbf16, #tpu.memory_space<vmem>>, %arg4: memref<32x96xbf16, #tpu.memory_space<vmem>>, %arg5: memref<1x96xf32, #tpu.memory_space<vmem>>, %arg6: memref<1x96xf32, #tpu.memory_space<vmem>>, %arg7: memref<32x96xbf16, #tpu.memory_space<vmem>>, %arg8: memref<32x96xbf16, #tpu.memory_space<vmem>>, %arg9: memref<1x96xf32, #tpu.memory_space<vmem>>, %arg10: memref<1x96xf32, #tpu.memory_space<vmem>>, %arg11: memref<8x2x32xbf16, #tpu.memory_space<vmem>>, %arg12: memref<2x32xbf16, #tpu.memory_space<vmem>>, %arg13: memref<8x2x96xf32, #tpu.memory_space<vmem>>, %arg14: memref<8x2x96xf32, #tpu.memory_space<vmem>>) attributes {dimension_semantics = [#tpu.dimension_semantics<arbitrary>], iteration_bounds = array<i64: 1>, scalar_prefetch = 0 : i64, scratch_operands = 2 : i64, tpu.core_type = #tpu.core_type<tc>, window_params = [{pipeline_mode = #tpu.pipeline_mode<synchronous>, transform_indices = @transform_0, window_bounds = array<i64: 16, 32>}, {pipeline_mode = #tpu.pipeline_mode<synchronous>, transform_indices = @transform_1, window_bounds = array<i64: 16, 32>}, {pipeline_mode = #tpu.pipeline_mode<synchronous>, transform_indices = @transform_2, window_bounds = array<i64: 32, 96>}, {pipeline_mode = #tpu.pipeline_mode<synchronous>, transform_indices = @transform_3, window_bounds = array<i64: 32, 96>}, {pipeline_mode = #tpu.pipeline_mode<synchronous>, transform_indices = @transform_4, window_bounds = array<i64: 1, 96>}, {pipeline_mode = #tpu.pipeline_mode<synchronous>, transform_indices = @transform_5, window_bounds = array<i64: 1, 96>}, {pipeline_mode = #tpu.pipeline_mode<synchronous>, transform_indices = @transform_6, window_bounds = array<i64: 32, 96>}, {pipeline_mode = #tpu.pipeline_mode<synchronous>, transform_indices = @transform_7, window_bounds = array<i64: 32, 96>}, {pipeline_mode = #tpu.pipeline_mode<synchronous>, transform_indices = @transform_8, window_bounds = array<i64: 1, 96>}, {pipeline_mode = #tpu.pipeline_mode<synchronous>, transform_indices = @transform_9, window_bounds = array<i64: 1, 96>}, {pipeline_mode = #tpu.pipeline_mode<synchronous>, transform_indices = @transform_10, window_bounds = array<i64: 8, 2, 32>}, {pipeline_mode = #tpu.pipeline_mode<synchronous>, transform_indices = @transform_11, window_bounds = array<i64: 2, 32>}]} {
    %c0 = arith.constant 0 : index
    %c0_0 = arith.constant 0 : index
    %0 = vector.load %arg4[%c0, %c0_0] : memref<32x96xbf16, #tpu.memory_space<vmem>>, vector<32x96xbf16>
    %c0_1 = arith.constant 0 : index
    %c0_2 = arith.constant 0 : index
    %1 = vector.load %arg8[%c0_1, %c0_2] : memref<32x96xbf16, #tpu.memory_space<vmem>>, vector<32x96xbf16>
    %c0_3 = arith.constant 0 : index
    %c0_4 = arith.constant 0 : index
    %2 = vector.load %arg6[%c0_3, %c0_4] : memref<1x96xf32, #tpu.memory_space<vmem>>, vector<1x96xf32>
    %3 = vector.shape_cast %2 : vector<1x96xf32> to vector<1x96xf32>
    %4 = vector.broadcast %3 : vector<1x96xf32> to vector<2x96xf32>
    %c0_5 = arith.constant 0 : index
    %c0_6 = arith.constant 0 : index
    %5 = vector.load %arg10[%c0_5, %c0_6] : memref<1x96xf32, #tpu.memory_space<vmem>>, vector<1x96xf32>
    %6 = vector.shape_cast %5 : vector<1x96xf32> to vector<1x96xf32>
    %7 = vector.broadcast %6 : vector<1x96xf32> to vector<2x96xf32>
    %c0_7 = arith.constant 0 : index
    %c0_8 = arith.constant 0 : index
    %8 = vector.load %arg1[%c0_7, %c0_8] : memref<16x32xbf16, #tpu.memory_space<vmem>>, vector<16x32xbf16>
    %c0_9 = arith.constant 0 : index
    %c0_10 = arith.constant 0 : index
    %9 = vector.load %arg3[%c0_9, %c0_10] : memref<32x96xbf16, #tpu.memory_space<vmem>>, vector<32x96xbf16>
    %cst = arith.constant dense<0.000000e+00> : vector<16x96xf32>
    %10 = tpu.matmul %8, %9, %cst {dimension_numbers = #tpu.dot_dimension_numbers<[1], [0], [0], [1], [0, 0, 1, 1], [], []>} : vector<16x32xbf16>, vector<32x96xbf16>, vector<16x96xf32> -> vector<16x96xf32>
    %c0_11 = arith.constant 0 : index
    %c0_12 = arith.constant 0 : index
    %11 = vector.load %arg5[%c0_11, %c0_12] : memref<1x96xf32, #tpu.memory_space<vmem>>, vector<1x96xf32>
    %12 = vector.broadcast %11 : vector<1x96xf32> to vector<16x96xf32>
    %13 = arith.addf %10, %12 : vector<16x96xf32>
    %c0_13 = arith.constant 0 : index
    %c0_14 = arith.constant 0 : index
    %14 = vector.load %arg2[%c0_13, %c0_14] : memref<16x32xbf16, #tpu.memory_space<vmem>>, vector<16x32xbf16>
    %c0_15 = arith.constant 0 : index
    %c0_16 = arith.constant 0 : index
    %15 = vector.load %arg7[%c0_15, %c0_16] : memref<32x96xbf16, #tpu.memory_space<vmem>>, vector<32x96xbf16>
    %cst_17 = arith.constant dense<0.000000e+00> : vector<16x96xf32>
    %16 = tpu.matmul %14, %15, %cst_17 {dimension_numbers = #tpu.dot_dimension_numbers<[1], [0], [0], [1], [0, 0, 1, 1], [], []>} : vector<16x32xbf16>, vector<32x96xbf16>, vector<16x96xf32> -> vector<16x96xf32>
    %c0_18 = arith.constant 0 : index
    %c0_19 = arith.constant 0 : index
    %17 = vector.load %arg9[%c0_18, %c0_19] : memref<1x96xf32, #tpu.memory_space<vmem>>, vector<1x96xf32>
    %18 = vector.broadcast %17 : vector<1x96xf32> to vector<16x96xf32>
    %19 = arith.addf %16, %18 : vector<16x96xf32>
    %20 = vector.extract_strided_slice %13 {offsets = [0, 0], sizes = [2, 96], strides = [1, 1]} : vector<16x96xf32> to vector<2x96xf32>
    %c0_20 = arith.constant 0 : index
    %c0_21 = arith.constant 0 : index
    %c0_22 = arith.constant 0 : index
    %21 = vector.load %arg13[%c0_20, %c0_21, %c0_22] : memref<8x2x96xf32, #tpu.memory_space<vmem>>, vector<1x2x96xf32>
    %22 = vector.shape_cast %21 : vector<1x2x96xf32> to vector<2x96xf32>
    %23 = vector.shape_cast %20 : vector<2x96xf32> to vector<1x2x96xf32>
    tpu.vector_store %arg13[%c0_20, %c0_21, %c0_22], %23 {strides = array<i32>} : memref<8x2x96xf32, #tpu.memory_space<vmem>>, vector<1x2x96xf32>,
    %24 = vector.extract_strided_slice %13 {offsets = [2, 0], sizes = [2, 96], strides = [1, 1]} : vector<16x96xf32> to vector<2x96xf32>
    %c1 = arith.constant 1 : index
    %c0_23 = arith.constant 0 : index
    %c0_24 = arith.constant 0 : index
    %25 = vector.load %arg13[%c1, %c0_23, %c0_24] : memref<8x2x96xf32, #tpu.memory_space<vmem>>, vector<1x2x96xf32>
    %26 = vector.shape_cast %25 : vector<1x2x96xf32> to vector<2x96xf32>
    %27 = vector.shape_cast %24 : vector<2x96xf32> to vector<1x2x96xf32>
    tpu.vector_store %arg13[%c1, %c0_23, %c0_24], %27 {strides = array<i32>} : memref<8x2x96xf32, #tpu.memory_space<vmem>>, vector<1x2x96xf32>,
    %28 = vector.extract_strided_slice %13 {offsets = [4, 0], sizes = [2, 96], strides = [1, 1]} : vector<16x96xf32> to vector<2x96xf32>
    %c2 = arith.constant 2 : index
    %c0_25 = arith.constant 0 : index
    %c0_26 = arith.constant 0 : index
    %29 = vector.load %arg13[%c2, %c0_25, %c0_26] : memref<8x2x96xf32, #tpu.memory_space<vmem>>, vector<1x2x96xf32>
    %30 = vector.shape_cast %29 : vector<1x2x96xf32> to vector<2x96xf32>
    %31 = vector.shape_cast %28 : vector<2x96xf32> to vector<1x2x96xf32>
    tpu.vector_store %arg13[%c2, %c0_25, %c0_26], %31 {strides = array<i32>} : memref<8x2x96xf32, #tpu.memory_space<vmem>>, vector<1x2x96xf32>,
    %32 = vector.extract_strided_slice %13 {offsets = [6, 0], sizes = [2, 96], strides = [1, 1]} : vector<16x96xf32> to vector<2x96xf32>
    %c3 = arith.constant 3 : index
    %c0_27 = arith.constant 0 : index
    %c0_28 = arith.constant 0 : index
    %33 = vector.load %arg13[%c3, %c0_27, %c0_28] : memref<8x2x96xf32, #tpu.memory_space<vmem>>, vector<1x2x96xf32>
    %34 = vector.shape_cast %33 : vector<1x2x96xf32> to vector<2x96xf32>
    %35 = vector.shape_cast %32 : vector<2x96xf32> to vector<1x2x96xf32>
    tpu.vector_store %arg13[%c3, %c0_27, %c0_28], %35 {strides = array<i32>} : memref<8x2x96xf32, #tpu.memory_space<vmem>>, vector<1x2x96xf32>,
    %36 = vector.extract_strided_slice %13 {offsets = [8, 0], sizes = [2, 96], strides = [1, 1]} : vector<16x96xf32> to vector<2x96xf32>
    %c4 = arith.constant 4 : index
    %c0_29 = arith.constant 0 : index
    %c0_30 = arith.constant 0 : index
    %37 = vector.load %arg13[%c4, %c0_29, %c0_30] : memref<8x2x96xf32, #tpu.memory_space<vmem>>, vector<1x2x96xf32>
    %38 = vector.shape_cast %37 : vector<1x2x96xf32> to vector<2x96xf32>
    %39 = vector.shape_cast %36 : vector<2x96xf32> to vector<1x2x96xf32>
    tpu.vector_store %arg13[%c4, %c0_29, %c0_30], %39 {strides = array<i32>} : memref<8x2x96xf32, #tpu.memory_space<vmem>>, vector<1x2x96xf32>,
    %40 = vector.extract_strided_slice %13 {offsets = [10, 0], sizes = [2, 96], strides = [1, 1]} : vector<16x96xf32> to vector<2x96xf32>
    %c5 = arith.constant 5 : index
    %c0_31 = arith.constant 0 : index
    %c0_32 = arith.constant 0 : index
    %41 = vector.load %arg13[%c5, %c0_31, %c0_32] : memref<8x2x96xf32, #tpu.memory_space<vmem>>, vector<1x2x96xf32>
    %42 = vector.shape_cast %41 : vector<1x2x96xf32> to vector<2x96xf32>
    %43 = vector.shape_cast %40 : vector<2x96xf32> to vector<1x2x96xf32>
    tpu.vector_store %arg13[%c5, %c0_31, %c0_32], %43 {strides = array<i32>} : memref<8x2x96xf32, #tpu.memory_space<vmem>>, vector<1x2x96xf32>,
    %44 = vector.extract_strided_slice %13 {offsets = [12, 0], sizes = [2, 96], strides = [1, 1]} : vector<16x96xf32> to vector<2x96xf32>
    %c6 = arith.constant 6 : index
    %c0_33 = arith.constant 0 : index
    %c0_34 = arith.constant 0 : index
    %45 = vector.load %arg13[%c6, %c0_33, %c0_34] : memref<8x2x96xf32, #tpu.memory_space<vmem>>, vector<1x2x96xf32>
    %46 = vector.shape_cast %45 : vector<1x2x96xf32> to vector<2x96xf32>
    %47 = vector.shape_cast %44 : vector<2x96xf32> to vector<1x2x96xf32>
    tpu.vector_store %arg13[%c6, %c0_33, %c0_34], %47 {strides = array<i32>} : memref<8x2x96xf32, #tpu.memory_space<vmem>>, vector<1x2x96xf32>,
    %48 = vector.extract_strided_slice %13 {offsets = [14, 0], sizes = [2, 96], strides = [1, 1]} : vector<16x96xf32> to vector<2x96xf32>
    %c7 = arith.constant 7 : index
    %c0_35 = arith.constant 0 : index
    %c0_36 = arith.constant 0 : index
    %49 = vector.load %arg13[%c7, %c0_35, %c0_36] : memref<8x2x96xf32, #tpu.memory_space<vmem>>, vector<1x2x96xf32>
    %50 = vector.shape_cast %49 : vector<1x2x96xf32> to vector<2x96xf32>
    %51 = vector.shape_cast %48 : vector<2x96xf32> to vector<1x2x96xf32>
    tpu.vector_store %arg13[%c7, %c0_35, %c0_36], %51 {strides = array<i32>} : memref<8x2x96xf32, #tpu.memory_space<vmem>>, vector<1x2x96xf32>,
    %52 = vector.extract_strided_slice %19 {offsets = [0, 0], sizes = [2, 96], strides = [1, 1]} : vector<16x96xf32> to vector<2x96xf32>
    %c0_37 = arith.constant 0 : index
    %c0_38 = arith.constant 0 : index
    %c0_39 = arith.constant 0 : index
    %53 = vector.load %arg14[%c0_37, %c0_38, %c0_39] : memref<8x2x96xf32, #tpu.memory_space<vmem>>, vector<1x2x96xf32>
    %54 = vector.shape_cast %53 : vector<1x2x96xf32> to vector<2x96xf32>
    %55 = vector.shape_cast %52 : vector<2x96xf32> to vector<1x2x96xf32>
    tpu.vector_store %arg14[%c0_37, %c0_38, %c0_39], %55 {strides = array<i32>} : memref<8x2x96xf32, #tpu.memory_space<vmem>>, vector<1x2x96xf32>,
    %56 = vector.extract_strided_slice %19 {offsets = [2, 0], sizes = [2, 96], strides = [1, 1]} : vector<16x96xf32> to vector<2x96xf32>
    %c1_40 = arith.constant 1 : index
    %c0_41 = arith.constant 0 : index
    %c0_42 = arith.constant 0 : index
    %57 = vector.load %arg14[%c1_40, %c0_41, %c0_42] : memref<8x2x96xf32, #tpu.memory_space<vmem>>, vector<1x2x96xf32>
    %58 = vector.shape_cast %57 : vector<1x2x96xf32> to vector<2x96xf32>
    %59 = vector.shape_cast %56 : vector<2x96xf32> to vector<1x2x96xf32>
    tpu.vector_store %arg14[%c1_40, %c0_41, %c0_42], %59 {strides = array<i32>} : memref<8x2x96xf32, #tpu.memory_space<vmem>>, vector<1x2x96xf32>,
    %60 = vector.extract_strided_slice %19 {offsets = [4, 0], sizes = [2, 96], strides = [1, 1]} : vector<16x96xf32> to vector<2x96xf32>
    %c2_43 = arith.constant 2 : index
    %c0_44 = arith.constant 0 : index
    %c0_45 = arith.constant 0 : index
    %61 = vector.load %arg14[%c2_43, %c0_44, %c0_45] : memref<8x2x96xf32, #tpu.memory_space<vmem>>, vector<1x2x96xf32>
    %62 = vector.shape_cast %61 : vector<1x2x96xf32> to vector<2x96xf32>
    %63 = vector.shape_cast %60 : vector<2x96xf32> to vector<1x2x96xf32>
    tpu.vector_store %arg14[%c2_43, %c0_44, %c0_45], %63 {strides = array<i32>} : memref<8x2x96xf32, #tpu.memory_space<vmem>>, vector<1x2x96xf32>,
    %64 = vector.extract_strided_slice %19 {offsets = [6, 0], sizes = [2, 96], strides = [1, 1]} : vector<16x96xf32> to vector<2x96xf32>
    %c3_46 = arith.constant 3 : index
    %c0_47 = arith.constant 0 : index
    %c0_48 = arith.constant 0 : index
    %65 = vector.load %arg14[%c3_46, %c0_47, %c0_48] : memref<8x2x96xf32, #tpu.memory_space<vmem>>, vector<1x2x96xf32>
    %66 = vector.shape_cast %65 : vector<1x2x96xf32> to vector<2x96xf32>
    %67 = vector.shape_cast %64 : vector<2x96xf32> to vector<1x2x96xf32>
    tpu.vector_store %arg14[%c3_46, %c0_47, %c0_48], %67 {strides = array<i32>} : memref<8x2x96xf32, #tpu.memory_space<vmem>>, vector<1x2x96xf32>,
    %68 = vector.extract_strided_slice %19 {offsets = [8, 0], sizes = [2, 96], strides = [1, 1]} : vector<16x96xf32> to vector<2x96xf32>
    %c4_49 = arith.constant 4 : index
    %c0_50 = arith.constant 0 : index
    %c0_51 = arith.constant 0 : index
    %69 = vector.load %arg14[%c4_49, %c0_50, %c0_51] : memref<8x2x96xf32, #tpu.memory_space<vmem>>, vector<1x2x96xf32>
    %70 = vector.shape_cast %69 : vector<1x2x96xf32> to vector<2x96xf32>
    %71 = vector.shape_cast %68 : vector<2x96xf32> to vector<1x2x96xf32>
    tpu.vector_store %arg14[%c4_49, %c0_50, %c0_51], %71 {strides = array<i32>} : memref<8x2x96xf32, #tpu.memory_space<vmem>>, vector<1x2x96xf32>,
    %72 = vector.extract_strided_slice %19 {offsets = [10, 0], sizes = [2, 96], strides = [1, 1]} : vector<16x96xf32> to vector<2x96xf32>
    %c5_52 = arith.constant 5 : index
    %c0_53 = arith.constant 0 : index
    %c0_54 = arith.constant 0 : index
    %73 = vector.load %arg14[%c5_52, %c0_53, %c0_54] : memref<8x2x96xf32, #tpu.memory_space<vmem>>, vector<1x2x96xf32>
    %74 = vector.shape_cast %73 : vector<1x2x96xf32> to vector<2x96xf32>
    %75 = vector.shape_cast %72 : vector<2x96xf32> to vector<1x2x96xf32>
    tpu.vector_store %arg14[%c5_52, %c0_53, %c0_54], %75 {strides = array<i32>} : memref<8x2x96xf32, #tpu.memory_space<vmem>>, vector<1x2x96xf32>,
    %76 = vector.extract_strided_slice %19 {offsets = [12, 0], sizes = [2, 96], strides = [1, 1]} : vector<16x96xf32> to vector<2x96xf32>
    %c6_55 = arith.constant 6 : index
    %c0_56 = arith.constant 0 : index
    %c0_57 = arith.constant 0 : index
    %77 = vector.load %arg14[%c6_55, %c0_56, %c0_57] : memref<8x2x96xf32, #tpu.memory_space<vmem>>, vector<1x2x96xf32>
    %78 = vector.shape_cast %77 : vector<1x2x96xf32> to vector<2x96xf32>
    %79 = vector.shape_cast %76 : vector<2x96xf32> to vector<1x2x96xf32>
    tpu.vector_store %arg14[%c6_55, %c0_56, %c0_57], %79 {strides = array<i32>} : memref<8x2x96xf32, #tpu.memory_space<vmem>>, vector<1x2x96xf32>,
    %80 = vector.extract_strided_slice %19 {offsets = [14, 0], sizes = [2, 96], strides = [1, 1]} : vector<16x96xf32> to vector<2x96xf32>
    %c7_58 = arith.constant 7 : index
    %c0_59 = arith.constant 0 : index
    %c0_60 = arith.constant 0 : index
    %81 = vector.load %arg14[%c7_58, %c0_59, %c0_60] : memref<8x2x96xf32, #tpu.memory_space<vmem>>, vector<1x2x96xf32>
    %82 = vector.shape_cast %81 : vector<1x2x96xf32> to vector<2x96xf32>
    %83 = vector.shape_cast %80 : vector<2x96xf32> to vector<1x2x96xf32>
    tpu.vector_store %arg14[%c7_58, %c0_59, %c0_60], %83 {strides = array<i32>} : memref<8x2x96xf32, #tpu.memory_space<vmem>>, vector<1x2x96xf32>,
    %cst_61 = arith.constant 0.000000e+00 : f32
    %84 = vector.broadcast %cst_61 : f32 to vector<2x32xf32>
    %c0_i32 = arith.constant 0 : i32
    %85 = arith.index_cast %c0_i32 : i32 to index
    %c0_62 = arith.constant 0 : index
    %c0_63 = arith.constant 0 : index
    %86 = vector.load %arg13[%85, %c0_62, %c0_63] : memref<8x2x96xf32, #tpu.memory_space<vmem>>, vector<1x2x96xf32>
    %87 = vector.shape_cast %86 : vector<1x2x96xf32> to vector<2x96xf32>
    %88 = arith.truncf %84 : vector<2x32xf32> to vector<2x32xbf16>
    %cst_64 = arith.constant dense<0.000000e+00> : vector<2x96xf32>
    %89 = tpu.matmul %88, %0, %cst_64 {dimension_numbers = #tpu.dot_dimension_numbers<[1], [0], [0], [1], [0, 0, 1, 1], [], []>} : vector<2x32xbf16>, vector<32x96xbf16>, vector<2x96xf32> -> vector<2x96xf32>
    %90 = arith.addf %89, %4 : vector<2x96xf32>
    %91 = vector.extract_strided_slice %87 {offsets = [0, 0], sizes = [2, 32], strides = [1, 1]} : vector<2x96xf32> to vector<2x32xf32>
    %92 = vector.extract_strided_slice %90 {offsets = [0, 0], sizes = [2, 32], strides = [1, 1]} : vector<2x96xf32> to vector<2x32xf32>
    %93 = arith.addf %91, %92 : vector<2x32xf32>
    %94 = arith.negf %93 : vector<2x32xf32>
    %95 = math.exp %94 : vector<2x32xf32>
    %cst_65 = arith.constant 1.000000e+00 : f32
    %96 = vector.broadcast %cst_65 : f32 to vector<2x32xf32>
    %97 = arith.addf %96, %95 : vector<2x32xf32>
    %98 = arith.divf %96, %97 : vector<2x32xf32>
    %99 = vector.extract_strided_slice %87 {offsets = [0, 32], sizes = [2, 32], strides = [1, 1]} : vector<2x96xf32> to vector<2x32xf32>
    %100 = vector.extract_strided_slice %90 {offsets = [0, 32], sizes = [2, 32], strides = [1, 1]} : vector<2x96xf32> to vector<2x32xf32>
    %101 = arith.addf %99, %100 : vector<2x32xf32>
    %102 = arith.negf %101 : vector<2x32xf32>
    %103 = math.exp %102 : vector<2x32xf32>
    %cst_66 = arith.constant 1.000000e+00 : f32
    %104 = vector.broadcast %cst_66 : f32 to vector<2x32xf32>
    %105 = arith.addf %104, %103 : vector<2x32xf32>
    %106 = arith.divf %104, %105 : vector<2x32xf32>
    %107 = vector.extract_strided_slice %87 {offsets = [0, 64], sizes = [2, 32], strides = [1, 1]} : vector<2x96xf32> to vector<2x32xf32>
    %108 = vector.extract_strided_slice %90 {offsets = [0, 64], sizes = [2, 32], strides = [1, 1]} : vector<2x96xf32> to vector<2x32xf32>
    %109 = arith.mulf %98, %108 : vector<2x32xf32>
    %110 = arith.addf %107, %109 : vector<2x32xf32>
    %111 = math.tanh %110 : vector<2x32xf32>
    %cst_67 = arith.constant 1.000000e+00 : f32
    %112 = vector.broadcast %cst_67 : f32 to vector<2x32xf32>
    %113 = arith.subf %112, %106 : vector<2x32xf32>
    %114 = arith.mulf %113, %111 : vector<2x32xf32>
    %115 = arith.mulf %106, %84 : vector<2x32xf32>
    %116 = arith.addf %114, %115 : vector<2x32xf32>
    %117 = arith.index_cast %c0_i32 : i32 to index
    %c0_68 = arith.constant 0 : index
    %c0_69 = arith.constant 0 : index
    %118 = vector.load %arg14[%117, %c0_68, %c0_69] : memref<8x2x96xf32, #tpu.memory_space<vmem>>, vector<1x2x96xf32>
    %119 = vector.shape_cast %118 : vector<1x2x96xf32> to vector<2x96xf32>
    %120 = arith.truncf %84 : vector<2x32xf32> to vector<2x32xbf16>
    %cst_70 = arith.constant dense<0.000000e+00> : vector<2x96xf32>
    %121 = tpu.matmul %120, %1, %cst_70 {dimension_numbers = #tpu.dot_dimension_numbers<[1], [0], [0], [1], [0, 0, 1, 1], [], []>} : vector<2x32xbf16>, vector<32x96xbf16>, vector<2x96xf32> -> vector<2x96xf32>
    %122 = arith.addf %121, %7 : vector<2x96xf32>
    %123 = vector.extract_strided_slice %119 {offsets = [0, 0], sizes = [2, 32], strides = [1, 1]} : vector<2x96xf32> to vector<2x32xf32>
    %124 = vector.extract_strided_slice %122 {offsets = [0, 0], sizes = [2, 32], strides = [1, 1]} : vector<2x96xf32> to vector<2x32xf32>
    %125 = arith.addf %123, %124 : vector<2x32xf32>
    %126 = arith.negf %125 : vector<2x32xf32>
    %127 = math.exp %126 : vector<2x32xf32>
    %cst_71 = arith.constant 1.000000e+00 : f32
    %128 = vector.broadcast %cst_71 : f32 to vector<2x32xf32>
    %129 = arith.addf %128, %127 : vector<2x32xf32>
    %130 = arith.divf %128, %129 : vector<2x32xf32>
    %131 = vector.extract_strided_slice %119 {offsets = [0, 32], sizes = [2, 32], strides = [1, 1]} : vector<2x96xf32> to vector<2x32xf32>
    %132 = vector.extract_strided_slice %122 {offsets = [0, 32], sizes = [2, 32], strides = [1, 1]} : vector<2x96xf32> to vector<2x32xf32>
    %133 = arith.addf %131, %132 : vector<2x32xf32>
    %134 = arith.negf %133 : vector<2x32xf32>
    %135 = math.exp %134 : vector<2x32xf32>
    %cst_72 = arith.constant 1.000000e+00 : f32
    %136 = vector.broadcast %cst_72 : f32 to vector<2x32xf32>
    %137 = arith.addf %136, %135 : vector<2x32xf32>
    %138 = arith.divf %136, %137 : vector<2x32xf32>
    %139 = vector.extract_strided_slice %119 {offsets = [0, 64], sizes = [2, 32], strides = [1, 1]} : vector<2x96xf32> to vector<2x32xf32>
    %140 = vector.extract_strided_slice %122 {offsets = [0, 64], sizes = [2, 32], strides = [1, 1]} : vector<2x96xf32> to vector<2x32xf32>
    %141 = arith.mulf %130, %140 : vector<2x32xf32>
    %142 = arith.addf %139, %141 : vector<2x32xf32>
    %143 = math.tanh %142 : vector<2x32xf32>
    %cst_73 = arith.constant 1.000000e+00 : f32
    %144 = vector.broadcast %cst_73 : f32 to vector<2x32xf32>
    %145 = arith.subf %144, %138 : vector<2x32xf32>
    %146 = arith.mulf %145, %143 : vector<2x32xf32>
    %147 = arith.mulf %138, %84 : vector<2x32xf32>
    %148 = arith.addf %146, %147 : vector<2x32xf32>
    %149 = arith.truncf %116 : vector<2x32xf32> to vector<2x32xbf16>
    %150 = arith.index_cast %c0_i32 : i32 to index
    %c0_74 = arith.constant 0 : index
    %c0_75 = arith.constant 0 : index
    %151 = vector.load %arg11[%150, %c0_74, %c0_75] : memref<8x2x32xbf16, #tpu.memory_space<vmem>>, vector<1x2x32xbf16>
    %152 = vector.shape_cast %151 : vector<1x2x32xbf16> to vector<2x32xbf16>
    %153 = vector.shape_cast %149 : vector<2x32xbf16> to vector<1x2x32xbf16>
    tpu.vector_store %arg11[%150, %c0_74, %c0_75], %153 {strides = array<i32>} : memref<8x2x32xbf16, #tpu.memory_space<vmem>>, vector<1x2x32xbf16>,
    %c1_i32 = arith.constant 1 : i32
    %154 = arith.index_cast %c1_i32 : i32 to index
    %c0_76 = arith.constant 0 : index
    %c0_77 = arith.constant 0 : index
    %155 = vector.load %arg13[%154, %c0_76, %c0_77] : memref<8x2x96xf32, #tpu.memory_space<vmem>>, vector<1x2x96xf32>
    %156 = vector.shape_cast %155 : vector<1x2x96xf32> to vector<2x96xf32>
    %157 = arith.truncf %116 : vector<2x32xf32> to vector<2x32xbf16>
    %cst_78 = arith.constant dense<0.000000e+00> : vector<2x96xf32>
    %158 = tpu.matmul %157, %0, %cst_78 {dimension_numbers = #tpu.dot_dimension_numbers<[1], [0], [0], [1], [0, 0, 1, 1], [], []>} : vector<2x32xbf16>, vector<32x96xbf16>, vector<2x96xf32> -> vector<2x96xf32>
    %159 = arith.addf %158, %4 : vector<2x96xf32>
    %160 = vector.extract_strided_slice %156 {offsets = [0, 0], sizes = [2, 32], strides = [1, 1]} : vector<2x96xf32> to vector<2x32xf32>
    %161 = vector.extract_strided_slice %159 {offsets = [0, 0], sizes = [2, 32], strides = [1, 1]} : vector<2x96xf32> to vector<2x32xf32>
    %162 = arith.addf %160, %161 : vector<2x32xf32>
    %163 = arith.negf %162 : vector<2x32xf32>
    %164 = math.exp %163 : vector<2x32xf32>
    %cst_79 = arith.constant 1.000000e+00 : f32
    %165 = vector.broadcast %cst_79 : f32 to vector<2x32xf32>
    %166 = arith.addf %165, %164 : vector<2x32xf32>
    %167 = arith.divf %165, %166 : vector<2x32xf32>
    %168 = vector.extract_strided_slice %156 {offsets = [0, 32], sizes = [2, 32], strides = [1, 1]} : vector<2x96xf32> to vector<2x32xf32>
    %169 = vector.extract_strided_slice %159 {offsets = [0, 32], sizes = [2, 32], strides = [1, 1]} : vector<2x96xf32> to vector<2x32xf32>
    %170 = arith.addf %168, %169 : vector<2x32xf32>
    %171 = arith.negf %170 : vector<2x32xf32>
    %172 = math.exp %171 : vector<2x32xf32>
    %cst_80 = arith.constant 1.000000e+00 : f32
    %173 = vector.broadcast %cst_80 : f32 to vector<2x32xf32>
    %174 = arith.addf %173, %172 : vector<2x32xf32>
    %175 = arith.divf %173, %174 : vector<2x32xf32>
    %176 = vector.extract_strided_slice %156 {offsets = [0, 64], sizes = [2, 32], strides = [1, 1]} : vector<2x96xf32> to vector<2x32xf32>
    %177 = vector.extract_strided_slice %159 {offsets = [0, 64], sizes = [2, 32], strides = [1, 1]} : vector<2x96xf32> to vector<2x32xf32>
    %178 = arith.mulf %167, %177 : vector<2x32xf32>
    %179 = arith.addf %176, %178 : vector<2x32xf32>
    %180 = math.tanh %179 : vector<2x32xf32>
    %cst_81 = arith.constant 1.000000e+00 : f32
    %181 = vector.broadcast %cst_81 : f32 to vector<2x32xf32>
    %182 = arith.subf %181, %175 : vector<2x32xf32>
    %183 = arith.mulf %182, %180 : vector<2x32xf32>
    %184 = arith.mulf %175, %116 : vector<2x32xf32>
    %185 = arith.addf %183, %184 : vector<2x32xf32>
    %186 = arith.index_cast %c1_i32 : i32 to index
    %c0_82 = arith.constant 0 : index
    %c0_83 = arith.constant 0 : index
    %187 = vector.load %arg14[%186, %c0_82, %c0_83] : memref<8x2x96xf32, #tpu.memory_space<vmem>>, vector<1x2x96xf32>
    %188 = vector.shape_cast %187 : vector<1x2x96xf32> to vector<2x96xf32>
    %189 = arith.truncf %148 : vector<2x32xf32> to vector<2x32xbf16>
    %cst_84 = arith.constant dense<0.000000e+00> : vector<2x96xf32>
    %190 = tpu.matmul %189, %1, %cst_84 {dimension_numbers = #tpu.dot_dimension_numbers<[1], [0], [0], [1], [0, 0, 1, 1], [], []>} : vector<2x32xbf16>, vector<32x96xbf16>, vector<2x96xf32> -> vector<2x96xf32>
    %191 = arith.addf %190, %7 : vector<2x96xf32>
    %192 = vector.extract_strided_slice %188 {offsets = [0, 0], sizes = [2, 32], strides = [1, 1]} : vector<2x96xf32> to vector<2x32xf32>
    %193 = vector.extract_strided_slice %191 {offsets = [0, 0], sizes = [2, 32], strides = [1, 1]} : vector<2x96xf32> to vector<2x32xf32>
    %194 = arith.addf %192, %193 : vector<2x32xf32>
    %195 = arith.negf %194 : vector<2x32xf32>
    %196 = math.exp %195 : vector<2x32xf32>
    %cst_85 = arith.constant 1.000000e+00 : f32
    %197 = vector.broadcast %cst_85 : f32 to vector<2x32xf32>
    %198 = arith.addf %197, %196 : vector<2x32xf32>
    %199 = arith.divf %197, %198 : vector<2x32xf32>
    %200 = vector.extract_strided_slice %188 {offsets = [0, 32], sizes = [2, 32], strides = [1, 1]} : vector<2x96xf32> to vector<2x32xf32>
    %201 = vector.extract_strided_slice %191 {offsets = [0, 32], sizes = [2, 32], strides = [1, 1]} : vector<2x96xf32> to vector<2x32xf32>
    %202 = arith.addf %200, %201 : vector<2x32xf32>
    %203 = arith.negf %202 : vector<2x32xf32>
    %204 = math.exp %203 : vector<2x32xf32>
    %cst_86 = arith.constant 1.000000e+00 : f32
    %205 = vector.broadcast %cst_86 : f32 to vector<2x32xf32>
    %206 = arith.addf %205, %204 : vector<2x32xf32>
    %207 = arith.divf %205, %206 : vector<2x32xf32>
    %208 = vector.extract_strided_slice %188 {offsets = [0, 64], sizes = [2, 32], strides = [1, 1]} : vector<2x96xf32> to vector<2x32xf32>
    %209 = vector.extract_strided_slice %191 {offsets = [0, 64], sizes = [2, 32], strides = [1, 1]} : vector<2x96xf32> to vector<2x32xf32>
    %210 = arith.mulf %199, %209 : vector<2x32xf32>
    %211 = arith.addf %208, %210 : vector<2x32xf32>
    %212 = math.tanh %211 : vector<2x32xf32>
    %cst_87 = arith.constant 1.000000e+00 : f32
    %213 = vector.broadcast %cst_87 : f32 to vector<2x32xf32>
    %214 = arith.subf %213, %207 : vector<2x32xf32>
    %215 = arith.mulf %214, %212 : vector<2x32xf32>
    %216 = arith.mulf %207, %148 : vector<2x32xf32>
    %217 = arith.addf %215, %216 : vector<2x32xf32>
    %218 = arith.truncf %185 : vector<2x32xf32> to vector<2x32xbf16>
    %219 = arith.index_cast %c1_i32 : i32 to index
    %c0_88 = arith.constant 0 : index
    %c0_89 = arith.constant 0 : index
    %220 = vector.load %arg11[%219, %c0_88, %c0_89] : memref<8x2x32xbf16, #tpu.memory_space<vmem>>, vector<1x2x32xbf16>
    %221 = vector.shape_cast %220 : vector<1x2x32xbf16> to vector<2x32xbf16>
    %222 = vector.shape_cast %218 : vector<2x32xbf16> to vector<1x2x32xbf16>
    tpu.vector_store %arg11[%219, %c0_88, %c0_89], %222 {strides = array<i32>} : memref<8x2x32xbf16, #tpu.memory_space<vmem>>, vector<1x2x32xbf16>,
    %c2_i32 = arith.constant 2 : i32
    %223 = arith.index_cast %c2_i32 : i32 to index
    %c0_90 = arith.constant 0 : index
    %c0_91 = arith.constant 0 : index
    %224 = vector.load %arg13[%223, %c0_90, %c0_91] : memref<8x2x96xf32, #tpu.memory_space<vmem>>, vector<1x2x96xf32>
    %225 = vector.shape_cast %224 : vector<1x2x96xf32> to vector<2x96xf32>
    %226 = arith.truncf %185 : vector<2x32xf32> to vector<2x32xbf16>
    %cst_92 = arith.constant dense<0.000000e+00> : vector<2x96xf32>
    %227 = tpu.matmul %226, %0, %cst_92 {dimension_numbers = #tpu.dot_dimension_numbers<[1], [0], [0], [1], [0, 0, 1, 1], [], []>} : vector<2x32xbf16>, vector<32x96xbf16>, vector<2x96xf32> -> vector<2x96xf32>
    %228 = arith.addf %227, %4 : vector<2x96xf32>
    %229 = vector.extract_strided_slice %225 {offsets = [0, 0], sizes = [2, 32], strides = [1, 1]} : vector<2x96xf32> to vector<2x32xf32>
    %230 = vector.extract_strided_slice %228 {offsets = [0, 0], sizes = [2, 32], strides = [1, 1]} : vector<2x96xf32> to vector<2x32xf32>
    %231 = arith.addf %229, %230 : vector<2x32xf32>
    %232 = arith.negf %231 : vector<2x32xf32>
    %233 = math.exp %232 : vector<2x32xf32>
    %cst_93 = arith.constant 1.000000e+00 : f32
    %234 = vector.broadcast %cst_93 : f32 to vector<2x32xf32>
    %235 = arith.addf %234, %233 : vector<2x32xf32>
    %236 = arith.divf %234, %235 : vector<2x32xf32>
    %237 = vector.extract_strided_slice %225 {offsets = [0, 32], sizes = [2, 32], strides = [1, 1]} : vector<2x96xf32> to vector<2x32xf32>
    %238 = vector.extract_strided_slice %228 {offsets = [0, 32], sizes = [2, 32], strides = [1, 1]} : vector<2x96xf32> to vector<2x32xf32>
    %239 = arith.addf %237, %238 : vector<2x32xf32>
    %240 = arith.negf %239 : vector<2x32xf32>
    %241 = math.exp %240 : vector<2x32xf32>
    %cst_94 = arith.constant 1.000000e+00 : f32
    %242 = vector.broadcast %cst_94 : f32 to vector<2x32xf32>
    %243 = arith.addf %242, %241 : vector<2x32xf32>
    %244 = arith.divf %242, %243 : vector<2x32xf32>
    %245 = vector.extract_strided_slice %225 {offsets = [0, 64], sizes = [2, 32], strides = [1, 1]} : vector<2x96xf32> to vector<2x32xf32>
    %246 = vector.extract_strided_slice %228 {offsets = [0, 64], sizes = [2, 32], strides = [1, 1]} : vector<2x96xf32> to vector<2x32xf32>
    %247 = arith.mulf %236, %246 : vector<2x32xf32>
    %248 = arith.addf %245, %247 : vector<2x32xf32>
    %249 = math.tanh %248 : vector<2x32xf32>
    %cst_95 = arith.constant 1.000000e+00 : f32
    %250 = vector.broadcast %cst_95 : f32 to vector<2x32xf32>
    %251 = arith.subf %250, %244 : vector<2x32xf32>
    %252 = arith.mulf %251, %249 : vector<2x32xf32>
    %253 = arith.mulf %244, %185 : vector<2x32xf32>
    %254 = arith.addf %252, %253 : vector<2x32xf32>
    %255 = arith.index_cast %c2_i32 : i32 to index
    %c0_96 = arith.constant 0 : index
    %c0_97 = arith.constant 0 : index
    %256 = vector.load %arg14[%255, %c0_96, %c0_97] : memref<8x2x96xf32, #tpu.memory_space<vmem>>, vector<1x2x96xf32>
    %257 = vector.shape_cast %256 : vector<1x2x96xf32> to vector<2x96xf32>
    %258 = arith.truncf %217 : vector<2x32xf32> to vector<2x32xbf16>
    %cst_98 = arith.constant dense<0.000000e+00> : vector<2x96xf32>
    %259 = tpu.matmul %258, %1, %cst_98 {dimension_numbers = #tpu.dot_dimension_numbers<[1], [0], [0], [1], [0, 0, 1, 1], [], []>} : vector<2x32xbf16>, vector<32x96xbf16>, vector<2x96xf32> -> vector<2x96xf32>
    %260 = arith.addf %259, %7 : vector<2x96xf32>
    %261 = vector.extract_strided_slice %257 {offsets = [0, 0], sizes = [2, 32], strides = [1, 1]} : vector<2x96xf32> to vector<2x32xf32>
    %262 = vector.extract_strided_slice %260 {offsets = [0, 0], sizes = [2, 32], strides = [1, 1]} : vector<2x96xf32> to vector<2x32xf32>
    %263 = arith.addf %261, %262 : vector<2x32xf32>
    %264 = arith.negf %263 : vector<2x32xf32>
    %265 = math.exp %264 : vector<2x32xf32>
    %cst_99 = arith.constant 1.000000e+00 : f32
    %266 = vector.broadcast %cst_99 : f32 to vector<2x32xf32>
    %267 = arith.addf %266, %265 : vector<2x32xf32>
    %268 = arith.divf %266, %267 : vector<2x32xf32>
    %269 = vector.extract_strided_slice %257 {offsets = [0, 32], sizes = [2, 32], strides = [1, 1]} : vector<2x96xf32> to vector<2x32xf32>
    %270 = vector.extract_strided_slice %260 {offsets = [0, 32], sizes = [2, 32], strides = [1, 1]} : vector<2x96xf32> to vector<2x32xf32>
    %271 = arith.addf %269, %270 : vector<2x32xf32>
    %272 = arith.negf %271 : vector<2x32xf32>
    %273 = math.exp %272 : vector<2x32xf32>
    %cst_100 = arith.constant 1.000000e+00 : f32
    %274 = vector.broadcast %cst_100 : f32 to vector<2x32xf32>
    %275 = arith.addf %274, %273 : vector<2x32xf32>
    %276 = arith.divf %274, %275 : vector<2x32xf32>
    %277 = vector.extract_strided_slice %257 {offsets = [0, 64], sizes = [2, 32], strides = [1, 1]} : vector<2x96xf32> to vector<2x32xf32>
    %278 = vector.extract_strided_slice %260 {offsets = [0, 64], sizes = [2, 32], strides = [1, 1]} : vector<2x96xf32> to vector<2x32xf32>
    %279 = arith.mulf %268, %278 : vector<2x32xf32>
    %280 = arith.addf %277, %279 : vector<2x32xf32>
    %281 = math.tanh %280 : vector<2x32xf32>
    %cst_101 = arith.constant 1.000000e+00 : f32
    %282 = vector.broadcast %cst_101 : f32 to vector<2x32xf32>
    %283 = arith.subf %282, %276 : vector<2x32xf32>
    %284 = arith.mulf %283, %281 : vector<2x32xf32>
    %285 = arith.mulf %276, %217 : vector<2x32xf32>
    %286 = arith.addf %284, %285 : vector<2x32xf32>
    %287 = arith.truncf %254 : vector<2x32xf32> to vector<2x32xbf16>
    %288 = arith.index_cast %c2_i32 : i32 to index
    %c0_102 = arith.constant 0 : index
    %c0_103 = arith.constant 0 : index
    %289 = vector.load %arg11[%288, %c0_102, %c0_103] : memref<8x2x32xbf16, #tpu.memory_space<vmem>>, vector<1x2x32xbf16>
    %290 = vector.shape_cast %289 : vector<1x2x32xbf16> to vector<2x32xbf16>
    %291 = vector.shape_cast %287 : vector<2x32xbf16> to vector<1x2x32xbf16>
    tpu.vector_store %arg11[%288, %c0_102, %c0_103], %291 {strides = array<i32>} : memref<8x2x32xbf16, #tpu.memory_space<vmem>>, vector<1x2x32xbf16>,
    %c3_i32 = arith.constant 3 : i32
    %292 = arith.index_cast %c3_i32 : i32 to index
    %c0_104 = arith.constant 0 : index
    %c0_105 = arith.constant 0 : index
    %293 = vector.load %arg13[%292, %c0_104, %c0_105] : memref<8x2x96xf32, #tpu.memory_space<vmem>>, vector<1x2x96xf32>
    %294 = vector.shape_cast %293 : vector<1x2x96xf32> to vector<2x96xf32>
    %295 = arith.truncf %254 : vector<2x32xf32> to vector<2x32xbf16>
    %cst_106 = arith.constant dense<0.000000e+00> : vector<2x96xf32>
    %296 = tpu.matmul %295, %0, %cst_106 {dimension_numbers = #tpu.dot_dimension_numbers<[1], [0], [0], [1], [0, 0, 1, 1], [], []>} : vector<2x32xbf16>, vector<32x96xbf16>, vector<2x96xf32> -> vector<2x96xf32>
    %297 = arith.addf %296, %4 : vector<2x96xf32>
    %298 = vector.extract_strided_slice %294 {offsets = [0, 0], sizes = [2, 32], strides = [1, 1]} : vector<2x96xf32> to vector<2x32xf32>
    %299 = vector.extract_strided_slice %297 {offsets = [0, 0], sizes = [2, 32], strides = [1, 1]} : vector<2x96xf32> to vector<2x32xf32>
    %300 = arith.addf %298, %299 : vector<2x32xf32>
    %301 = arith.negf %300 : vector<2x32xf32>
    %302 = math.exp %301 : vector<2x32xf32>
    %cst_107 = arith.constant 1.000000e+00 : f32
    %303 = vector.broadcast %cst_107 : f32 to vector<2x32xf32>
    %304 = arith.addf %303, %302 : vector<2x32xf32>
    %305 = arith.divf %303, %304 : vector<2x32xf32>
    %306 = vector.extract_strided_slice %294 {offsets = [0, 32], sizes = [2, 32], strides = [1, 1]} : vector<2x96xf32> to vector<2x32xf32>
    %307 = vector.extract_strided_slice %297 {offsets = [0, 32], sizes = [2, 32], strides = [1, 1]} : vector<2x96xf32> to vector<2x32xf32>
    %308 = arith.addf %306, %307 : vector<2x32xf32>
    %309 = arith.negf %308 : vector<2x32xf32>
    %310 = math.exp %309 : vector<2x32xf32>
    %cst_108 = arith.constant 1.000000e+00 : f32
    %311 = vector.broadcast %cst_108 : f32 to vector<2x32xf32>
    %312 = arith.addf %311, %310 : vector<2x32xf32>
    %313 = arith.divf %311, %312 : vector<2x32xf32>
    %314 = vector.extract_strided_slice %294 {offsets = [0, 64], sizes = [2, 32], strides = [1, 1]} : vector<2x96xf32> to vector<2x32xf32>
    %315 = vector.extract_strided_slice %297 {offsets = [0, 64], sizes = [2, 32], strides = [1, 1]} : vector<2x96xf32> to vector<2x32xf32>
    %316 = arith.mulf %305, %315 : vector<2x32xf32>
    %317 = arith.addf %314, %316 : vector<2x32xf32>
    %318 = math.tanh %317 : vector<2x32xf32>
    %cst_109 = arith.constant 1.000000e+00 : f32
    %319 = vector.broadcast %cst_109 : f32 to vector<2x32xf32>
    %320 = arith.subf %319, %313 : vector<2x32xf32>
    %321 = arith.mulf %320, %318 : vector<2x32xf32>
    %322 = arith.mulf %313, %254 : vector<2x32xf32>
    %323 = arith.addf %321, %322 : vector<2x32xf32>
    %324 = arith.index_cast %c3_i32 : i32 to index
    %c0_110 = arith.constant 0 : index
    %c0_111 = arith.constant 0 : index
    %325 = vector.load %arg14[%324, %c0_110, %c0_111] : memref<8x2x96xf32, #tpu.memory_space<vmem>>, vector<1x2x96xf32>
    %326 = vector.shape_cast %325 : vector<1x2x96xf32> to vector<2x96xf32>
    %327 = arith.truncf %286 : vector<2x32xf32> to vector<2x32xbf16>
    %cst_112 = arith.constant dense<0.000000e+00> : vector<2x96xf32>
    %328 = tpu.matmul %327, %1, %cst_112 {dimension_numbers = #tpu.dot_dimension_numbers<[1], [0], [0], [1], [0, 0, 1, 1], [], []>} : vector<2x32xbf16>, vector<32x96xbf16>, vector<2x96xf32> -> vector<2x96xf32>
    %329 = arith.addf %328, %7 : vector<2x96xf32>
    %330 = vector.extract_strided_slice %326 {offsets = [0, 0], sizes = [2, 32], strides = [1, 1]} : vector<2x96xf32> to vector<2x32xf32>
    %331 = vector.extract_strided_slice %329 {offsets = [0, 0], sizes = [2, 32], strides = [1, 1]} : vector<2x96xf32> to vector<2x32xf32>
    %332 = arith.addf %330, %331 : vector<2x32xf32>
    %333 = arith.negf %332 : vector<2x32xf32>
    %334 = math.exp %333 : vector<2x32xf32>
    %cst_113 = arith.constant 1.000000e+00 : f32
    %335 = vector.broadcast %cst_113 : f32 to vector<2x32xf32>
    %336 = arith.addf %335, %334 : vector<2x32xf32>
    %337 = arith.divf %335, %336 : vector<2x32xf32>
    %338 = vector.extract_strided_slice %326 {offsets = [0, 32], sizes = [2, 32], strides = [1, 1]} : vector<2x96xf32> to vector<2x32xf32>
    %339 = vector.extract_strided_slice %329 {offsets = [0, 32], sizes = [2, 32], strides = [1, 1]} : vector<2x96xf32> to vector<2x32xf32>
    %340 = arith.addf %338, %339 : vector<2x32xf32>
    %341 = arith.negf %340 : vector<2x32xf32>
    %342 = math.exp %341 : vector<2x32xf32>
    %cst_114 = arith.constant 1.000000e+00 : f32
    %343 = vector.broadcast %cst_114 : f32 to vector<2x32xf32>
    %344 = arith.addf %343, %342 : vector<2x32xf32>
    %345 = arith.divf %343, %344 : vector<2x32xf32>
    %346 = vector.extract_strided_slice %326 {offsets = [0, 64], sizes = [2, 32], strides = [1, 1]} : vector<2x96xf32> to vector<2x32xf32>
    %347 = vector.extract_strided_slice %329 {offsets = [0, 64], sizes = [2, 32], strides = [1, 1]} : vector<2x96xf32> to vector<2x32xf32>
    %348 = arith.mulf %337, %347 : vector<2x32xf32>
    %349 = arith.addf %346, %348 : vector<2x32xf32>
    %350 = math.tanh %349 : vector<2x32xf32>
    %cst_115 = arith.constant 1.000000e+00 : f32
    %351 = vector.broadcast %cst_115 : f32 to vector<2x32xf32>
    %352 = arith.subf %351, %345 : vector<2x32xf32>
    %353 = arith.mulf %352, %350 : vector<2x32xf32>
    %354 = arith.mulf %345, %286 : vector<2x32xf32>
    %355 = arith.addf %353, %354 : vector<2x32xf32>
    %356 = arith.truncf %323 : vector<2x32xf32> to vector<2x32xbf16>
    %357 = arith.index_cast %c3_i32 : i32 to index
    %c0_116 = arith.constant 0 : index
    %c0_117 = arith.constant 0 : index
    %358 = vector.load %arg11[%357, %c0_116, %c0_117] : memref<8x2x32xbf16, #tpu.memory_space<vmem>>, vector<1x2x32xbf16>
    %359 = vector.shape_cast %358 : vector<1x2x32xbf16> to vector<2x32xbf16>
    %360 = vector.shape_cast %356 : vector<2x32xbf16> to vector<1x2x32xbf16>
    tpu.vector_store %arg11[%357, %c0_116, %c0_117], %360 {strides = array<i32>} : memref<8x2x32xbf16, #tpu.memory_space<vmem>>, vector<1x2x32xbf16>,
    %c4_i32 = arith.constant 4 : i32
    %361 = arith.index_cast %c4_i32 : i32 to index
    %c0_118 = arith.constant 0 : index
    %c0_119 = arith.constant 0 : index
    %362 = vector.load %arg13[%361, %c0_118, %c0_119] : memref<8x2x96xf32, #tpu.memory_space<vmem>>, vector<1x2x96xf32>
    %363 = vector.shape_cast %362 : vector<1x2x96xf32> to vector<2x96xf32>
    %364 = arith.truncf %323 : vector<2x32xf32> to vector<2x32xbf16>
    %cst_120 = arith.constant dense<0.000000e+00> : vector<2x96xf32>
    %365 = tpu.matmul %364, %0, %cst_120 {dimension_numbers = #tpu.dot_dimension_numbers<[1], [0], [0], [1], [0, 0, 1, 1], [], []>} : vector<2x32xbf16>, vector<32x96xbf16>, vector<2x96xf32> -> vector<2x96xf32>
    %366 = arith.addf %365, %4 : vector<2x96xf32>
    %367 = vector.extract_strided_slice %363 {offsets = [0, 0], sizes = [2, 32], strides = [1, 1]} : vector<2x96xf32> to vector<2x32xf32>
    %368 = vector.extract_strided_slice %366 {offsets = [0, 0], sizes = [2, 32], strides = [1, 1]} : vector<2x96xf32> to vector<2x32xf32>
    %369 = arith.addf %367, %368 : vector<2x32xf32>
    %370 = arith.negf %369 : vector<2x32xf32>
    %371 = math.exp %370 : vector<2x32xf32>
    %cst_121 = arith.constant 1.000000e+00 : f32
    %372 = vector.broadcast %cst_121 : f32 to vector<2x32xf32>
    %373 = arith.addf %372, %371 : vector<2x32xf32>
    %374 = arith.divf %372, %373 : vector<2x32xf32>
    %375 = vector.extract_strided_slice %363 {offsets = [0, 32], sizes = [2, 32], strides = [1, 1]} : vector<2x96xf32> to vector<2x32xf32>
    %376 = vector.extract_strided_slice %366 {offsets = [0, 32], sizes = [2, 32], strides = [1, 1]} : vector<2x96xf32> to vector<2x32xf32>
    %377 = arith.addf %375, %376 : vector<2x32xf32>
    %378 = arith.negf %377 : vector<2x32xf32>
    %379 = math.exp %378 : vector<2x32xf32>
    %cst_122 = arith.constant 1.000000e+00 : f32
    %380 = vector.broadcast %cst_122 : f32 to vector<2x32xf32>
    %381 = arith.addf %380, %379 : vector<2x32xf32>
    %382 = arith.divf %380, %381 : vector<2x32xf32>
    %383 = vector.extract_strided_slice %363 {offsets = [0, 64], sizes = [2, 32], strides = [1, 1]} : vector<2x96xf32> to vector<2x32xf32>
    %384 = vector.extract_strided_slice %366 {offsets = [0, 64], sizes = [2, 32], strides = [1, 1]} : vector<2x96xf32> to vector<2x32xf32>
    %385 = arith.mulf %374, %384 : vector<2x32xf32>
    %386 = arith.addf %383, %385 : vector<2x32xf32>
    %387 = math.tanh %386 : vector<2x32xf32>
    %cst_123 = arith.constant 1.000000e+00 : f32
    %388 = vector.broadcast %cst_123 : f32 to vector<2x32xf32>
    %389 = arith.subf %388, %382 : vector<2x32xf32>
    %390 = arith.mulf %389, %387 : vector<2x32xf32>
    %391 = arith.mulf %382, %323 : vector<2x32xf32>
    %392 = arith.addf %390, %391 : vector<2x32xf32>
    %393 = arith.index_cast %c4_i32 : i32 to index
    %c0_124 = arith.constant 0 : index
    %c0_125 = arith.constant 0 : index
    %394 = vector.load %arg14[%393, %c0_124, %c0_125] : memref<8x2x96xf32, #tpu.memory_space<vmem>>, vector<1x2x96xf32>
    %395 = vector.shape_cast %394 : vector<1x2x96xf32> to vector<2x96xf32>
    %396 = arith.truncf %355 : vector<2x32xf32> to vector<2x32xbf16>
    %cst_126 = arith.constant dense<0.000000e+00> : vector<2x96xf32>
    %397 = tpu.matmul %396, %1, %cst_126 {dimension_numbers = #tpu.dot_dimension_numbers<[1], [0], [0], [1], [0, 0, 1, 1], [], []>} : vector<2x32xbf16>, vector<32x96xbf16>, vector<2x96xf32> -> vector<2x96xf32>
    %398 = arith.addf %397, %7 : vector<2x96xf32>
    %399 = vector.extract_strided_slice %395 {offsets = [0, 0], sizes = [2, 32], strides = [1, 1]} : vector<2x96xf32> to vector<2x32xf32>
    %400 = vector.extract_strided_slice %398 {offsets = [0, 0], sizes = [2, 32], strides = [1, 1]} : vector<2x96xf32> to vector<2x32xf32>
    %401 = arith.addf %399, %400 : vector<2x32xf32>
    %402 = arith.negf %401 : vector<2x32xf32>
    %403 = math.exp %402 : vector<2x32xf32>
    %cst_127 = arith.constant 1.000000e+00 : f32
    %404 = vector.broadcast %cst_127 : f32 to vector<2x32xf32>
    %405 = arith.addf %404, %403 : vector<2x32xf32>
    %406 = arith.divf %404, %405 : vector<2x32xf32>
    %407 = vector.extract_strided_slice %395 {offsets = [0, 32], sizes = [2, 32], strides = [1, 1]} : vector<2x96xf32> to vector<2x32xf32>
    %408 = vector.extract_strided_slice %398 {offsets = [0, 32], sizes = [2, 32], strides = [1, 1]} : vector<2x96xf32> to vector<2x32xf32>
    %409 = arith.addf %407, %408 : vector<2x32xf32>
    %410 = arith.negf %409 : vector<2x32xf32>
    %411 = math.exp %410 : vector<2x32xf32>
    %cst_128 = arith.constant 1.000000e+00 : f32
    %412 = vector.broadcast %cst_128 : f32 to vector<2x32xf32>
    %413 = arith.addf %412, %411 : vector<2x32xf32>
    %414 = arith.divf %412, %413 : vector<2x32xf32>
    %415 = vector.extract_strided_slice %395 {offsets = [0, 64], sizes = [2, 32], strides = [1, 1]} : vector<2x96xf32> to vector<2x32xf32>
    %416 = vector.extract_strided_slice %398 {offsets = [0, 64], sizes = [2, 32], strides = [1, 1]} : vector<2x96xf32> to vector<2x32xf32>
    %417 = arith.mulf %406, %416 : vector<2x32xf32>
    %418 = arith.addf %415, %417 : vector<2x32xf32>
    %419 = math.tanh %418 : vector<2x32xf32>
    %cst_129 = arith.constant 1.000000e+00 : f32
    %420 = vector.broadcast %cst_129 : f32 to vector<2x32xf32>
    %421 = arith.subf %420, %414 : vector<2x32xf32>
    %422 = arith.mulf %421, %419 : vector<2x32xf32>
    %423 = arith.mulf %414, %355 : vector<2x32xf32>
    %424 = arith.addf %422, %423 : vector<2x32xf32>
    %425 = arith.truncf %392 : vector<2x32xf32> to vector<2x32xbf16>
    %426 = arith.index_cast %c4_i32 : i32 to index
    %c0_130 = arith.constant 0 : index
    %c0_131 = arith.constant 0 : index
    %427 = vector.load %arg11[%426, %c0_130, %c0_131] : memref<8x2x32xbf16, #tpu.memory_space<vmem>>, vector<1x2x32xbf16>
    %428 = vector.shape_cast %427 : vector<1x2x32xbf16> to vector<2x32xbf16>
    %429 = vector.shape_cast %425 : vector<2x32xbf16> to vector<1x2x32xbf16>
    tpu.vector_store %arg11[%426, %c0_130, %c0_131], %429 {strides = array<i32>} : memref<8x2x32xbf16, #tpu.memory_space<vmem>>, vector<1x2x32xbf16>,
    %c5_i32 = arith.constant 5 : i32
    %430 = arith.index_cast %c5_i32 : i32 to index
    %c0_132 = arith.constant 0 : index
    %c0_133 = arith.constant 0 : index
    %431 = vector.load %arg13[%430, %c0_132, %c0_133] : memref<8x2x96xf32, #tpu.memory_space<vmem>>, vector<1x2x96xf32>
    %432 = vector.shape_cast %431 : vector<1x2x96xf32> to vector<2x96xf32>
    %433 = arith.truncf %392 : vector<2x32xf32> to vector<2x32xbf16>
    %cst_134 = arith.constant dense<0.000000e+00> : vector<2x96xf32>
    %434 = tpu.matmul %433, %0, %cst_134 {dimension_numbers = #tpu.dot_dimension_numbers<[1], [0], [0], [1], [0, 0, 1, 1], [], []>} : vector<2x32xbf16>, vector<32x96xbf16>, vector<2x96xf32> -> vector<2x96xf32>
    %435 = arith.addf %434, %4 : vector<2x96xf32>
    %436 = vector.extract_strided_slice %432 {offsets = [0, 0], sizes = [2, 32], strides = [1, 1]} : vector<2x96xf32> to vector<2x32xf32>
    %437 = vector.extract_strided_slice %435 {offsets = [0, 0], sizes = [2, 32], strides = [1, 1]} : vector<2x96xf32> to vector<2x32xf32>
    %438 = arith.addf %436, %437 : vector<2x32xf32>
    %439 = arith.negf %438 : vector<2x32xf32>
    %440 = math.exp %439 : vector<2x32xf32>
    %cst_135 = arith.constant 1.000000e+00 : f32
    %441 = vector.broadcast %cst_135 : f32 to vector<2x32xf32>
    %442 = arith.addf %441, %440 : vector<2x32xf32>
    %443 = arith.divf %441, %442 : vector<2x32xf32>
    %444 = vector.extract_strided_slice %432 {offsets = [0, 32], sizes = [2, 32], strides = [1, 1]} : vector<2x96xf32> to vector<2x32xf32>
    %445 = vector.extract_strided_slice %435 {offsets = [0, 32], sizes = [2, 32], strides = [1, 1]} : vector<2x96xf32> to vector<2x32xf32>
    %446 = arith.addf %444, %445 : vector<2x32xf32>
    %447 = arith.negf %446 : vector<2x32xf32>
    %448 = math.exp %447 : vector<2x32xf32>
    %cst_136 = arith.constant 1.000000e+00 : f32
    %449 = vector.broadcast %cst_136 : f32 to vector<2x32xf32>
    %450 = arith.addf %449, %448 : vector<2x32xf32>
    %451 = arith.divf %449, %450 : vector<2x32xf32>
    %452 = vector.extract_strided_slice %432 {offsets = [0, 64], sizes = [2, 32], strides = [1, 1]} : vector<2x96xf32> to vector<2x32xf32>
    %453 = vector.extract_strided_slice %435 {offsets = [0, 64], sizes = [2, 32], strides = [1, 1]} : vector<2x96xf32> to vector<2x32xf32>
    %454 = arith.mulf %443, %453 : vector<2x32xf32>
    %455 = arith.addf %452, %454 : vector<2x32xf32>
    %456 = math.tanh %455 : vector<2x32xf32>
    %cst_137 = arith.constant 1.000000e+00 : f32
    %457 = vector.broadcast %cst_137 : f32 to vector<2x32xf32>
    %458 = arith.subf %457, %451 : vector<2x32xf32>
    %459 = arith.mulf %458, %456 : vector<2x32xf32>
    %460 = arith.mulf %451, %392 : vector<2x32xf32>
    %461 = arith.addf %459, %460 : vector<2x32xf32>
    %462 = arith.index_cast %c5_i32 : i32 to index
    %c0_138 = arith.constant 0 : index
    %c0_139 = arith.constant 0 : index
    %463 = vector.load %arg14[%462, %c0_138, %c0_139] : memref<8x2x96xf32, #tpu.memory_space<vmem>>, vector<1x2x96xf32>
    %464 = vector.shape_cast %463 : vector<1x2x96xf32> to vector<2x96xf32>
    %465 = arith.truncf %424 : vector<2x32xf32> to vector<2x32xbf16>
    %cst_140 = arith.constant dense<0.000000e+00> : vector<2x96xf32>
    %466 = tpu.matmul %465, %1, %cst_140 {dimension_numbers = #tpu.dot_dimension_numbers<[1], [0], [0], [1], [0, 0, 1, 1], [], []>} : vector<2x32xbf16>, vector<32x96xbf16>, vector<2x96xf32> -> vector<2x96xf32>
    %467 = arith.addf %466, %7 : vector<2x96xf32>
    %468 = vector.extract_strided_slice %464 {offsets = [0, 0], sizes = [2, 32], strides = [1, 1]} : vector<2x96xf32> to vector<2x32xf32>
    %469 = vector.extract_strided_slice %467 {offsets = [0, 0], sizes = [2, 32], strides = [1, 1]} : vector<2x96xf32> to vector<2x32xf32>
    %470 = arith.addf %468, %469 : vector<2x32xf32>
    %471 = arith.negf %470 : vector<2x32xf32>
    %472 = math.exp %471 : vector<2x32xf32>
    %cst_141 = arith.constant 1.000000e+00 : f32
    %473 = vector.broadcast %cst_141 : f32 to vector<2x32xf32>
    %474 = arith.addf %473, %472 : vector<2x32xf32>
    %475 = arith.divf %473, %474 : vector<2x32xf32>
    %476 = vector.extract_strided_slice %464 {offsets = [0, 32], sizes = [2, 32], strides = [1, 1]} : vector<2x96xf32> to vector<2x32xf32>
    %477 = vector.extract_strided_slice %467 {offsets = [0, 32], sizes = [2, 32], strides = [1, 1]} : vector<2x96xf32> to vector<2x32xf32>
    %478 = arith.addf %476, %477 : vector<2x32xf32>
    %479 = arith.negf %478 : vector<2x32xf32>
    %480 = math.exp %479 : vector<2x32xf32>
    %cst_142 = arith.constant 1.000000e+00 : f32
    %481 = vector.broadcast %cst_142 : f32 to vector<2x32xf32>
    %482 = arith.addf %481, %480 : vector<2x32xf32>
    %483 = arith.divf %481, %482 : vector<2x32xf32>
    %484 = vector.extract_strided_slice %464 {offsets = [0, 64], sizes = [2, 32], strides = [1, 1]} : vector<2x96xf32> to vector<2x32xf32>
    %485 = vector.extract_strided_slice %467 {offsets = [0, 64], sizes = [2, 32], strides = [1, 1]} : vector<2x96xf32> to vector<2x32xf32>
    %486 = arith.mulf %475, %485 : vector<2x32xf32>
    %487 = arith.addf %484, %486 : vector<2x32xf32>
    %488 = math.tanh %487 : vector<2x32xf32>
    %cst_143 = arith.constant 1.000000e+00 : f32
    %489 = vector.broadcast %cst_143 : f32 to vector<2x32xf32>
    %490 = arith.subf %489, %483 : vector<2x32xf32>
    %491 = arith.mulf %490, %488 : vector<2x32xf32>
    %492 = arith.mulf %483, %424 : vector<2x32xf32>
    %493 = arith.addf %491, %492 : vector<2x32xf32>
    %494 = arith.truncf %461 : vector<2x32xf32> to vector<2x32xbf16>
    %495 = arith.index_cast %c5_i32 : i32 to index
    %c0_144 = arith.constant 0 : index
    %c0_145 = arith.constant 0 : index
    %496 = vector.load %arg11[%495, %c0_144, %c0_145] : memref<8x2x32xbf16, #tpu.memory_space<vmem>>, vector<1x2x32xbf16>
    %497 = vector.shape_cast %496 : vector<1x2x32xbf16> to vector<2x32xbf16>
    %498 = vector.shape_cast %494 : vector<2x32xbf16> to vector<1x2x32xbf16>
    tpu.vector_store %arg11[%495, %c0_144, %c0_145], %498 {strides = array<i32>} : memref<8x2x32xbf16, #tpu.memory_space<vmem>>, vector<1x2x32xbf16>,
    %c6_i32 = arith.constant 6 : i32
    %499 = arith.index_cast %c6_i32 : i32 to index
    %c0_146 = arith.constant 0 : index
    %c0_147 = arith.constant 0 : index
    %500 = vector.load %arg13[%499, %c0_146, %c0_147] : memref<8x2x96xf32, #tpu.memory_space<vmem>>, vector<1x2x96xf32>
    %501 = vector.shape_cast %500 : vector<1x2x96xf32> to vector<2x96xf32>
    %502 = arith.truncf %461 : vector<2x32xf32> to vector<2x32xbf16>
    %cst_148 = arith.constant dense<0.000000e+00> : vector<2x96xf32>
    %503 = tpu.matmul %502, %0, %cst_148 {dimension_numbers = #tpu.dot_dimension_numbers<[1], [0], [0], [1], [0, 0, 1, 1], [], []>} : vector<2x32xbf16>, vector<32x96xbf16>, vector<2x96xf32> -> vector<2x96xf32>
    %504 = arith.addf %503, %4 : vector<2x96xf32>
    %505 = vector.extract_strided_slice %501 {offsets = [0, 0], sizes = [2, 32], strides = [1, 1]} : vector<2x96xf32> to vector<2x32xf32>
    %506 = vector.extract_strided_slice %504 {offsets = [0, 0], sizes = [2, 32], strides = [1, 1]} : vector<2x96xf32> to vector<2x32xf32>
    %507 = arith.addf %505, %506 : vector<2x32xf32>
    %508 = arith.negf %507 : vector<2x32xf32>
    %509 = math.exp %508 : vector<2x32xf32>
    %cst_149 = arith.constant 1.000000e+00 : f32
    %510 = vector.broadcast %cst_149 : f32 to vector<2x32xf32>
    %511 = arith.addf %510, %509 : vector<2x32xf32>
    %512 = arith.divf %510, %511 : vector<2x32xf32>
    %513 = vector.extract_strided_slice %501 {offsets = [0, 32], sizes = [2, 32], strides = [1, 1]} : vector<2x96xf32> to vector<2x32xf32>
    %514 = vector.extract_strided_slice %504 {offsets = [0, 32], sizes = [2, 32], strides = [1, 1]} : vector<2x96xf32> to vector<2x32xf32>
    %515 = arith.addf %513, %514 : vector<2x32xf32>
    %516 = arith.negf %515 : vector<2x32xf32>
    %517 = math.exp %516 : vector<2x32xf32>
    %cst_150 = arith.constant 1.000000e+00 : f32
    %518 = vector.broadcast %cst_150 : f32 to vector<2x32xf32>
    %519 = arith.addf %518, %517 : vector<2x32xf32>
    %520 = arith.divf %518, %519 : vector<2x32xf32>
    %521 = vector.extract_strided_slice %501 {offsets = [0, 64], sizes = [2, 32], strides = [1, 1]} : vector<2x96xf32> to vector<2x32xf32>
    %522 = vector.extract_strided_slice %504 {offsets = [0, 64], sizes = [2, 32], strides = [1, 1]} : vector<2x96xf32> to vector<2x32xf32>
    %523 = arith.mulf %512, %522 : vector<2x32xf32>
    %524 = arith.addf %521, %523 : vector<2x32xf32>
    %525 = math.tanh %524 : vector<2x32xf32>
    %cst_151 = arith.constant 1.000000e+00 : f32
    %526 = vector.broadcast %cst_151 : f32 to vector<2x32xf32>
    %527 = arith.subf %526, %520 : vector<2x32xf32>
    %528 = arith.mulf %527, %525 : vector<2x32xf32>
    %529 = arith.mulf %520, %461 : vector<2x32xf32>
    %530 = arith.addf %528, %529 : vector<2x32xf32>
    %531 = arith.index_cast %c6_i32 : i32 to index
    %c0_152 = arith.constant 0 : index
    %c0_153 = arith.constant 0 : index
    %532 = vector.load %arg14[%531, %c0_152, %c0_153] : memref<8x2x96xf32, #tpu.memory_space<vmem>>, vector<1x2x96xf32>
    %533 = vector.shape_cast %532 : vector<1x2x96xf32> to vector<2x96xf32>
    %534 = arith.truncf %493 : vector<2x32xf32> to vector<2x32xbf16>
    %cst_154 = arith.constant dense<0.000000e+00> : vector<2x96xf32>
    %535 = tpu.matmul %534, %1, %cst_154 {dimension_numbers = #tpu.dot_dimension_numbers<[1], [0], [0], [1], [0, 0, 1, 1], [], []>} : vector<2x32xbf16>, vector<32x96xbf16>, vector<2x96xf32> -> vector<2x96xf32>
    %536 = arith.addf %535, %7 : vector<2x96xf32>
    %537 = vector.extract_strided_slice %533 {offsets = [0, 0], sizes = [2, 32], strides = [1, 1]} : vector<2x96xf32> to vector<2x32xf32>
    %538 = vector.extract_strided_slice %536 {offsets = [0, 0], sizes = [2, 32], strides = [1, 1]} : vector<2x96xf32> to vector<2x32xf32>
    %539 = arith.addf %537, %538 : vector<2x32xf32>
    %540 = arith.negf %539 : vector<2x32xf32>
    %541 = math.exp %540 : vector<2x32xf32>
    %cst_155 = arith.constant 1.000000e+00 : f32
    %542 = vector.broadcast %cst_155 : f32 to vector<2x32xf32>
    %543 = arith.addf %542, %541 : vector<2x32xf32>
    %544 = arith.divf %542, %543 : vector<2x32xf32>
    %545 = vector.extract_strided_slice %533 {offsets = [0, 32], sizes = [2, 32], strides = [1, 1]} : vector<2x96xf32> to vector<2x32xf32>
    %546 = vector.extract_strided_slice %536 {offsets = [0, 32], sizes = [2, 32], strides = [1, 1]} : vector<2x96xf32> to vector<2x32xf32>
    %547 = arith.addf %545, %546 : vector<2x32xf32>
    %548 = arith.negf %547 : vector<2x32xf32>
    %549 = math.exp %548 : vector<2x32xf32>
    %cst_156 = arith.constant 1.000000e+00 : f32
    %550 = vector.broadcast %cst_156 : f32 to vector<2x32xf32>
    %551 = arith.addf %550, %549 : vector<2x32xf32>
    %552 = arith.divf %550, %551 : vector<2x32xf32>
    %553 = vector.extract_strided_slice %533 {offsets = [0, 64], sizes = [2, 32], strides = [1, 1]} : vector<2x96xf32> to vector<2x32xf32>
    %554 = vector.extract_strided_slice %536 {offsets = [0, 64], sizes = [2, 32], strides = [1, 1]} : vector<2x96xf32> to vector<2x32xf32>
    %555 = arith.mulf %544, %554 : vector<2x32xf32>
    %556 = arith.addf %553, %555 : vector<2x32xf32>
    %557 = math.tanh %556 : vector<2x32xf32>
    %cst_157 = arith.constant 1.000000e+00 : f32
    %558 = vector.broadcast %cst_157 : f32 to vector<2x32xf32>
    %559 = arith.subf %558, %552 : vector<2x32xf32>
    %560 = arith.mulf %559, %557 : vector<2x32xf32>
    %561 = arith.mulf %552, %493 : vector<2x32xf32>
    %562 = arith.addf %560, %561 : vector<2x32xf32>
    %563 = arith.truncf %530 : vector<2x32xf32> to vector<2x32xbf16>
    %564 = arith.index_cast %c6_i32 : i32 to index
    %c0_158 = arith.constant 0 : index
    %c0_159 = arith.constant 0 : index
    %565 = vector.load %arg11[%564, %c0_158, %c0_159] : memref<8x2x32xbf16, #tpu.memory_space<vmem>>, vector<1x2x32xbf16>
    %566 = vector.shape_cast %565 : vector<1x2x32xbf16> to vector<2x32xbf16>
    %567 = vector.shape_cast %563 : vector<2x32xbf16> to vector<1x2x32xbf16>
    tpu.vector_store %arg11[%564, %c0_158, %c0_159], %567 {strides = array<i32>} : memref<8x2x32xbf16, #tpu.memory_space<vmem>>, vector<1x2x32xbf16>,
    %c7_i32 = arith.constant 7 : i32
    %568 = arith.index_cast %c7_i32 : i32 to index
    %c0_160 = arith.constant 0 : index
    %c0_161 = arith.constant 0 : index
    %569 = vector.load %arg13[%568, %c0_160, %c0_161] : memref<8x2x96xf32, #tpu.memory_space<vmem>>, vector<1x2x96xf32>
    %570 = vector.shape_cast %569 : vector<1x2x96xf32> to vector<2x96xf32>
    %571 = arith.truncf %530 : vector<2x32xf32> to vector<2x32xbf16>
    %cst_162 = arith.constant dense<0.000000e+00> : vector<2x96xf32>
    %572 = tpu.matmul %571, %0, %cst_162 {dimension_numbers = #tpu.dot_dimension_numbers<[1], [0], [0], [1], [0, 0, 1, 1], [], []>} : vector<2x32xbf16>, vector<32x96xbf16>, vector<2x96xf32> -> vector<2x96xf32>
    %573 = arith.addf %572, %4 : vector<2x96xf32>
    %574 = vector.extract_strided_slice %570 {offsets = [0, 0], sizes = [2, 32], strides = [1, 1]} : vector<2x96xf32> to vector<2x32xf32>
    %575 = vector.extract_strided_slice %573 {offsets = [0, 0], sizes = [2, 32], strides = [1, 1]} : vector<2x96xf32> to vector<2x32xf32>
    %576 = arith.addf %574, %575 : vector<2x32xf32>
    %577 = arith.negf %576 : vector<2x32xf32>
    %578 = math.exp %577 : vector<2x32xf32>
    %cst_163 = arith.constant 1.000000e+00 : f32
    %579 = vector.broadcast %cst_163 : f32 to vector<2x32xf32>
    %580 = arith.addf %579, %578 : vector<2x32xf32>
    %581 = arith.divf %579, %580 : vector<2x32xf32>
    %582 = vector.extract_strided_slice %570 {offsets = [0, 32], sizes = [2, 32], strides = [1, 1]} : vector<2x96xf32> to vector<2x32xf32>
    %583 = vector.extract_strided_slice %573 {offsets = [0, 32], sizes = [2, 32], strides = [1, 1]} : vector<2x96xf32> to vector<2x32xf32>
    %584 = arith.addf %582, %583 : vector<2x32xf32>
    %585 = arith.negf %584 : vector<2x32xf32>
    %586 = math.exp %585 : vector<2x32xf32>
    %cst_164 = arith.constant 1.000000e+00 : f32
    %587 = vector.broadcast %cst_164 : f32 to vector<2x32xf32>
    %588 = arith.addf %587, %586 : vector<2x32xf32>
    %589 = arith.divf %587, %588 : vector<2x32xf32>
    %590 = vector.extract_strided_slice %570 {offsets = [0, 64], sizes = [2, 32], strides = [1, 1]} : vector<2x96xf32> to vector<2x32xf32>
    %591 = vector.extract_strided_slice %573 {offsets = [0, 64], sizes = [2, 32], strides = [1, 1]} : vector<2x96xf32> to vector<2x32xf32>
    %592 = arith.mulf %581, %591 : vector<2x32xf32>
    %593 = arith.addf %590, %592 : vector<2x32xf32>
    %594 = math.tanh %593 : vector<2x32xf32>
    %cst_165 = arith.constant 1.000000e+00 : f32
    %595 = vector.broadcast %cst_165 : f32 to vector<2x32xf32>
    %596 = arith.subf %595, %589 : vector<2x32xf32>
    %597 = arith.mulf %596, %594 : vector<2x32xf32>
    %598 = arith.mulf %589, %530 : vector<2x32xf32>
    %599 = arith.addf %597, %598 : vector<2x32xf32>
    %600 = arith.index_cast %c7_i32 : i32 to index
    %c0_166 = arith.constant 0 : index
    %c0_167 = arith.constant 0 : index
    %601 = vector.load %arg14[%600, %c0_166, %c0_167] : memref<8x2x96xf32, #tpu.memory_space<vmem>>, vector<1x2x96xf32>
    %602 = vector.shape_cast %601 : vector<1x2x96xf32> to vector<2x96xf32>
    %603 = arith.truncf %562 : vector<2x32xf32> to vector<2x32xbf16>
    %cst_168 = arith.constant dense<0.000000e+00> : vector<2x96xf32>
    %604 = tpu.matmul %603, %1, %cst_168 {dimension_numbers = #tpu.dot_dimension_numbers<[1], [0], [0], [1], [0, 0, 1, 1], [], []>} : vector<2x32xbf16>, vector<32x96xbf16>, vector<2x96xf32> -> vector<2x96xf32>
    %605 = arith.addf %604, %7 : vector<2x96xf32>
    %606 = vector.extract_strided_slice %602 {offsets = [0, 0], sizes = [2, 32], strides = [1, 1]} : vector<2x96xf32> to vector<2x32xf32>
    %607 = vector.extract_strided_slice %605 {offsets = [0, 0], sizes = [2, 32], strides = [1, 1]} : vector<2x96xf32> to vector<2x32xf32>
    %608 = arith.addf %606, %607 : vector<2x32xf32>
    %609 = arith.negf %608 : vector<2x32xf32>
    %610 = math.exp %609 : vector<2x32xf32>
    %cst_169 = arith.constant 1.000000e+00 : f32
    %611 = vector.broadcast %cst_169 : f32 to vector<2x32xf32>
    %612 = arith.addf %611, %610 : vector<2x32xf32>
    %613 = arith.divf %611, %612 : vector<2x32xf32>
    %614 = vector.extract_strided_slice %602 {offsets = [0, 32], sizes = [2, 32], strides = [1, 1]} : vector<2x96xf32> to vector<2x32xf32>
    %615 = vector.extract_strided_slice %605 {offsets = [0, 32], sizes = [2, 32], strides = [1, 1]} : vector<2x96xf32> to vector<2x32xf32>
    %616 = arith.addf %614, %615 : vector<2x32xf32>
    %617 = arith.negf %616 : vector<2x32xf32>
    %618 = math.exp %617 : vector<2x32xf32>
    %cst_170 = arith.constant 1.000000e+00 : f32
    %619 = vector.broadcast %cst_170 : f32 to vector<2x32xf32>
    %620 = arith.addf %619, %618 : vector<2x32xf32>
    %621 = arith.divf %619, %620 : vector<2x32xf32>
    %622 = vector.extract_strided_slice %602 {offsets = [0, 64], sizes = [2, 32], strides = [1, 1]} : vector<2x96xf32> to vector<2x32xf32>
    %623 = vector.extract_strided_slice %605 {offsets = [0, 64], sizes = [2, 32], strides = [1, 1]} : vector<2x96xf32> to vector<2x32xf32>
    %624 = arith.mulf %613, %623 : vector<2x32xf32>
    %625 = arith.addf %622, %624 : vector<2x32xf32>
    %626 = math.tanh %625 : vector<2x32xf32>
    %cst_171 = arith.constant 1.000000e+00 : f32
    %627 = vector.broadcast %cst_171 : f32 to vector<2x32xf32>
    %628 = arith.subf %627, %621 : vector<2x32xf32>
    %629 = arith.mulf %628, %626 : vector<2x32xf32>
    %630 = arith.mulf %621, %562 : vector<2x32xf32>
    %631 = arith.addf %629, %630 : vector<2x32xf32>
    %632 = arith.truncf %599 : vector<2x32xf32> to vector<2x32xbf16>
    %633 = arith.index_cast %c7_i32 : i32 to index
    %c0_172 = arith.constant 0 : index
    %c0_173 = arith.constant 0 : index
    %634 = vector.load %arg11[%633, %c0_172, %c0_173] : memref<8x2x32xbf16, #tpu.memory_space<vmem>>, vector<1x2x32xbf16>
    %635 = vector.shape_cast %634 : vector<1x2x32xbf16> to vector<2x32xbf16>
    %636 = vector.shape_cast %632 : vector<2x32xbf16> to vector<1x2x32xbf16>
    tpu.vector_store %arg11[%633, %c0_172, %c0_173], %636 {strides = array<i32>} : memref<8x2x32xbf16, #tpu.memory_space<vmem>>, vector<1x2x32xbf16>,
    %c8_i32 = arith.constant 8 : i32
    %637 = arith.truncf %631 : vector<2x32xf32> to vector<2x32xbf16>
    %c0_174 = arith.constant 0 : index
    %c0_175 = arith.constant 0 : index
    %638 = vector.load %arg12[%c0_174, %c0_175] : memref<2x32xbf16, #tpu.memory_space<vmem>>, vector<2x32xbf16>
    tpu.vector_store %arg12[%c0_174, %c0_175], %637 {strides = array<i32>} : memref<2x32xbf16, #tpu.memory_space<vmem>>, vector<2x32xbf16>,
    return
  }
  func.func @transform_0(%arg0: i32) -> (i32, i32) {
    %c0_i32 = arith.constant 0 : i32
    %c0_i32_0 = arith.constant 0 : i32
    %c0_i32_1 = arith.constant 0 : i32
    return %c0_i32, %c0_i32_0 : i32, i32
  }
  func.func @transform_1(%arg0: i32) -> (i32, i32) {
    %c0_i32 = arith.constant 0 : i32
    %c0_i32_0 = arith.constant 0 : i32
    %c0_i32_1 = arith.constant 0 : i32
    return %c0_i32, %c0_i32_0 : i32, i32
  }
  func.func @transform_2(%arg0: i32) -> (i32, i32) {
    %c0_i32 = arith.constant 0 : i32
    %c0_i32_0 = arith.constant 0 : i32
    %c0_i32_1 = arith.constant 0 : i32
    return %c0_i32, %c0_i32_0 : i32, i32
  }
  func.func @transform_3(%arg0: i32) -> (i32, i32) {
    %c0_i32 = arith.constant 0 : i32
    %c0_i32_0 = arith.constant 0 : i32
    %c0_i32_1 = arith.constant 0 : i32
    return %c0_i32, %c0_i32_0 : i32, i32
  }
  func.func @transform_4(%arg0: i32) -> (i32, i32) {
    %c0_i32 = arith.constant 0 : i32
    %c0_i32_0 = arith.constant 0 : i32
    %c0_i32_1 = arith.constant 0 : i32
    return %c0_i32, %c0_i32_0 : i32, i32
  }
  func.func @transform_5(%arg0: i32) -> (i32, i32) {
    %c0_i32 = arith.constant 0 : i32
    %c0_i32_0 = arith.constant 0 : i32
    %c0_i32_1 = arith.constant 0 : i32
    return %c0_i32, %c0_i32_0 : i32, i32
  }
  func.func @transform_6(%arg0: i32) -> (i32, i32) {
    %c0_i32 = arith.constant 0 : i32
    %c0_i32_0 = arith.constant 0 : i32
    %c0_i32_1 = arith.constant 0 : i32
    return %c0_i32, %c0_i32_0 : i32, i32
  }
  func.func @transform_7(%arg0: i32) -> (i32, i32) {
    %c0_i32 = arith.constant 0 : i32
    %c0_i32_0 = arith.constant 0 : i32
    %c0_i32_1 = arith.constant 0 : i32
    return %c0_i32, %c0_i32_0 : i32, i32
  }
  func.func @transform_8(%arg0: i32) -> (i32, i32) {
    %c0_i32 = arith.constant 0 : i32
    %c0_i32_0 = arith.constant 0 : i32
    %c0_i32_1 = arith.constant 0 : i32
    return %c0_i32, %c0_i32_0 : i32, i32
  }
  func.func @transform_9(%arg0: i32) -> (i32, i32) {
    %c0_i32 = arith.constant 0 : i32
    %c0_i32_0 = arith.constant 0 : i32
    %c0_i32_1 = arith.constant 0 : i32
    return %c0_i32, %c0_i32_0 : i32, i32
  }
  func.func @transform_10(%arg0: i32) -> (i32, i32, i32) {
    %c0_i32 = arith.constant 0 : i32
    %c0_i32_0 = arith.constant 0 : i32
    %c0_i32_1 = arith.constant 0 : i32
    %c0_i32_2 = arith.constant 0 : i32
    return %c0_i32, %c0_i32_0, %c0_i32_1 : i32, i32, i32
  }
  func.func @transform_11(%arg0: i32) -> (i32, i32) {
    %c0_i32 = arith.constant 0 : i32
    %c0_i32_0 = arith.constant 0 : i32
    %c0_i32_1 = arith.constant 0 : i32
    return %c0_i32, %c0_i32_0 : i32, i32
  }
}

</mosaic_0001>

<bundles_post_ra>
// kernel: tpu_custom_call.1
= control target key start
LH: loop header
LB: loop body
LE: loop exit
PB: predicated region body
PF: predicated region fallthrough
CT: control target
= control target key end

     0   :  { %17 = vsyncpa [#allocation5], 0  ;;  %s2796_s0 = inlined_call_operand.hbm [shape: bf16[16,32], index: 0, kind: input, shape index: {}]   ;;  %s2797_s1 = inlined_call_operand.hbm [shape: bf16[16,32], index: 1, kind: input, shape index: {}]   ;;  %s2798_s2 = inlined_call_operand.hbm [shape: bf16[32,96], index: 2, kind: input, shape index: {}]   ;;  %s2799_s3 = inlined_call_operand.hbm [shape: bf16[32,96], index: 3, kind: input, shape index: {}]   ;;  %s2800_s4 = inlined_call_operand.vmem [shape: f32[1,96], index: 4, kind: input, shape index: {}]   ;;  %s2801_s5 = inlined_call_operand.vmem [shape: f32[1,96], index: 5, kind: input, shape index: {}]   ;;  %s2802_s6 = inlined_call_operand.vmem [shape: bf16[32,96], index: 6, kind: input, shape index: {}]   ;;  %s2803_s7 = inlined_call_operand.hbm [shape: bf16[32,96], index: 7, kind: input, shape index: {}]   ;;  %s2804_s8 = inlined_call_operand.vmem [shape: f32[1,96], index: 8, kind: input, shape index: {}]   ;;  %s2805_s9 = inlined_call_operand.vmem [shape: f32[1,96], index: 9, kind: input, shape index: {}]   ;;  %s2806_s10 = inlined_call_operand.hbm [shape: bf16[8,2,32], index: 10, kind: output, shape index: {0}]   ;;  %s2807_s11 = inlined_call_operand.hbm [shape: bf16[2,32], index: 11, kind: output, shape index: {1}]  }
   0x1   :  { %18 = vsyncpa [#allocation8], 0 }
   0x2   :  { %19 = vsyncpa [#allocation11], 0 }
   0x3   :  { %20 = vsyncpa [#allocation6], 0 }
   0x4   :  { %21 = vsyncpa [#allocation15], 0  ;;  %s2247_s17 = smov [#allocation7]   ;;  %s2248_s19 = smov [#allocation10]  }
   0x5   :  { %s39_s18 = sshll.u32 %s2247_s17, 4  ;;  %s63_s20 = sshll.u32 %s2248_s19, 4  ;;  %s40_s18 = int_to_ptr.vmem [resolvable:$true] %s39_s18  ;;  %s2323_s20 = int_to_ptr.vmem [resolvable:$true] %s63_s20 }
   0x6   :  { %s2083_s23 = scalar_lea.hbm %s2797_s1, 128 }
   0x7   :  { %p2084_p0 = scmp.ne.s32.totalorder %s2797_s1, %s2083_s23  ;;  %p2087_p1 = scmp.lt.u32.totalorder %s2083_s23, %s2797_s1 }
   0x9   :  { %p2089_p2 = pnand %p2087_p1, %p2084_p0 }
   0xb   :  { %2092 = shalt.err (!%p2089_p2)
}
   0xc   :  { %s2093_s28 = scalar_lea.vmem %s40_s18, 128  ;;  %p2098_p4 = scmp.lt.s32.totalorder %s40_s18, %s40_s18 }
   0xd   :  { %p2094_p3 = scmp.ne.s32.totalorder %s40_s18, %s2093_s28  ;;  %p2099_p5 = scmp.lt.s32.totalorder %s2093_s28, %s2093_s28 }
   0xf   :  { %p2100_p6 = por %p2099_p5, %p2098_p4 }
  0x11   :  { %p2101_p7 = pnand %p2100_p6, %p2094_p3 }
  0x13   :  { %2104 = shalt.err (!%p2101_p7)
}
  0x14   :  { %s2249_s29 = smov 64   ;;  %s2250_s30 = smov 4  }
  0x15   :  { %45 = dma.hbm_to_vmem [thread:$0]  %s2797_s1, 128, %s40_s18, [#allocation8], %s2249_s29, %s2249_s29, %s2250_s30  }
  0x16   :  { %s2105_s16 = scalar_lea.hbm %s2799_s3, 256 }
  0x17   :  { %p2106_p8 = scmp.ne.s32.totalorder %s2799_s3, %s2105_s16  ;;  %p2109_p9 = scmp.lt.u32.totalorder %s2105_s16, %s2799_s3 }
  0x19   :  { %p2111_p10 = pnand %p2109_p9, %p2106_p8 }
  0x1b   :  { %2114 = shalt.err (!%p2111_p10)
}
  0x1c   :  { %s2115_s23 = scalar_lea.vmem %s2323_s20, 256  ;;  %p2120_p12 = scmp.lt.s32.totalorder %s2323_s20, %s2323_s20 }
  0x1d   :  { %p2116_p11 = scmp.ne.s32.totalorder %s2323_s20, %s2115_s23  ;;  %p2121_p13 = scmp.lt.s32.totalorder %s2115_s23, %s2115_s23 }
  0x1f   :  { %p2122_p0 = por %p2121_p13, %p2120_p12 }
  0x21   :  { %p2123_p1 = pnand %p2122_p0, %p2116_p11 }
  0x23   :  { %2126 = shalt.err (!%p2123_p1)
}
  0x24   :  { %69 = dma.hbm_to_vmem [thread:$0]  %s2799_s3, 256, %s2323_s20, [#allocation11], %s2249_s29, %s2249_s29, %s2250_s30  }
  0x25   :  { %s2251_s24 = smov [#allocation4]   ;;  %s2252_s26 = smov [#allocation9]  }
  0x26   :  { %s27_s25 = sshll.u32 %s2251_s24, 4  ;;  %s51_s27 = sshll.u32 %s2252_s26, 4  ;;  %s28_s25 = int_to_ptr.vmem [resolvable:$true] %s27_s25  ;;  %s2360_s27 = int_to_ptr.vmem [resolvable:$true] %s51_s27 }
  0x27   :  { %s2127_s13 = scalar_lea.hbm %s2796_s0, 128 }
  0x28   :  { %p2128_p2 = scmp.ne.s32.totalorder %s2796_s0, %s2127_s13  ;;  %p2131_p3 = scmp.lt.u32.totalorder %s2127_s13, %s2796_s0 }
  0x2a   :  { %p2133_p4 = pnand %p2131_p3, %p2128_p2 }
  0x2c   :  { %2136 = shalt.err (!%p2133_p4)
}
  0x2d   :  { %s2137_s3 = scalar_lea.vmem %s28_s25, 128  ;;  %p2142_p6 = scmp.lt.s32.totalorder %s28_s25, %s28_s25 }
  0x2e   :  { %p2138_p5 = scmp.ne.s32.totalorder %s28_s25, %s2137_s3  ;;  %p2143_p7 = scmp.lt.s32.totalorder %s2137_s3, %s2137_s3 }
  0x30   :  { %p2144_p8 = por %p2143_p7, %p2142_p6 }
  0x32   :  { %p2145_p9 = pnand %p2144_p8, %p2138_p5 }
  0x34   :  { %2148 = shalt.err (!%p2145_p9)
}
  0x35   :  { %33 = dma.hbm_to_vmem [thread:$0]  %s2796_s0, 128, %s28_s25, [#allocation5], %s2249_s29, %s2249_s29, %s2250_s30  }
  0x36   :  { %s2149_s23 = scalar_lea.hbm %s2798_s2, 256 }
  0x37   :  { %p2150_p10 = scmp.ne.s32.totalorder %s2798_s2, %s2149_s23  ;;  %p2153_p11 = scmp.lt.u32.totalorder %s2149_s23, %s2798_s2 }
  0x39   :  { %p2155_p12 = pnand %p2153_p11, %p2150_p10 }
  0x3b   :  { %2158 = shalt.err (!%p2155_p12)
}
  0x3c   :  { %s2159_s28 = scalar_lea.vmem %s2360_s27, 256  ;;  %p2164_p0 = scmp.lt.s32.totalorder %s2360_s27, %s2360_s27 }
  0x3d   :  { %p2160_p13 = scmp.ne.s32.totalorder %s2360_s27, %s2159_s28  ;;  %p2165_p1 = scmp.lt.s32.totalorder %s2159_s28, %s2159_s28 }
  0x3f   :  { %p2166_p2 = por %p2165_p1, %p2164_p0 }
  0x41   :  { %p2167_p3 = pnand %p2166_p2, %p2160_p13 }
  0x43   :  { %2170 = shalt.err (!%p2167_p3)
}
  0x44   :  { %57 = dma.hbm_to_vmem [thread:$0]  %s2798_s2, 256, %s2360_s27, [#allocation8], %s2249_s29, %s2249_s29, %s2250_s30  }
  0x45   :  { %s2253_s12 = smov [#allocation12]   ;;  %s2171_s16 = scalar_lea.hbm %s2803_s7, 256 }
  0x46   :  { %s81_s13 = sshll.u32 %s2253_s12, 4  ;;  %p2172_p4 = scmp.ne.s32.totalorder %s2803_s7, %s2171_s16  ;;  %s82_s13 = int_to_ptr.vmem [resolvable:$true] %s81_s13 }
  0x47   :  { %p2175_p5 = scmp.lt.u32.totalorder %s2171_s16, %s2803_s7 }
  0x49   :  { %p2177_p6 = pnand %p2175_p5, %p2172_p4 }
  0x4b   :  { %2180 = shalt.err (!%p2177_p6)
}
  0x4c   :  { %s2181_s21 = scalar_lea.vmem %s82_s13, 256  ;;  %p2186_p8 = scmp.lt.s32.totalorder %s82_s13, %s82_s13 }
  0x4d   :  { %p2182_p7 = scmp.ne.s32.totalorder %s82_s13, %s2181_s21  ;;  %p2187_p9 = scmp.lt.s32.totalorder %s2181_s21, %s2181_s21 }
  0x4f   :  { %p2188_p10 = por %p2187_p9, %p2186_p8 }
  0x51   :  { %p2189_p11 = pnand %p2188_p10, %p2182_p7 }
  0x53   :  { %2192 = shalt.err (!%p2189_p11)
}
  0x54   :  { %87 = dma.hbm_to_vmem [thread:$0]  %s2803_s7, 256, %s82_s13, [#allocation11], %s2249_s29, %s2249_s29, %s2250_s30  }
  0x55   :  { %2237 = dma.done.wait [#allocation5], 128  }
  0x56   :  { %2238 = vsyncadd [#allocation5], 4294967168 }
  0x57   :  { %2239 = dma.done.wait [#allocation8], 384  }
  0x58   :  { %2240 = vsyncadd [#allocation8], 4294966912 }
  0x59   :  { %2241 = dma.done.wait [#allocation11], 512  }
  0x5a   :  { %2242 = vsyncadd [#allocation11], 4294966784  ;;  %v2254_v0 = vmov 0.0   ;;  %vm2255_vm0 = vmmov 0   ;;  %v1977_v1 = vld [vmem:[#allocation9] sm:$0xff]   ;;  %v1979_v3 = vld [vmem:[#allocation9 + $0x8] sm:$0xff]  }
  0x5b   :  { %1817 = vmatprep.subr.bf16.mxu0 %v2254_v0  ;;  %1825 = vmatprep.subr.bf16.mxu1 %v2254_v0  ;;  %v1978_v2 = vld [vmem:[%s2802_s6] sm:$0xff]   ;;  %v1980_v4 = vld [vmem:[%s2802_s6 + $0x8] sm:$0xff]   ;;  %v1981_v5 = vld [vmem:[#allocation4] sm:$0xff]   ;;  %vm160_vm1 = vcmask 261120   ;;  %v2256_v11 = vmov 0   ;;  %vm279_vm2 = vcmask 779264  }
  0x5c   :  { %1821 = vmatprep.mubr.msk.bf16.mxu0 %vm2255_vm0, %v2254_v0  ;;  %1829 = vmatprep.mubr.msk.bf16.mxu1 %vm2255_vm0, %v2254_v0  ;;  %v2426_v6 = vld [vmem:[#allocation10] sm:$0xff]   ;;  %v1983_v7 = vld [vmem:[#allocation7] sm:$0xff]   ;;  %v2429_v8 = vld [vmem:[#allocation12] sm:$0xff]   ;;  %vm282_vm3 = vcmask 781314   ;;  %vm285_vm4 = vcmask 783364   ;;  %vm288_vm5 = vcmask 785414  }
  0x5d   :  { %1818 = vmatpush3.bf16.msra.mxu0 %v1977_v1  ;;  %1826 = vmatpush3.bf16.msra.mxu1 %v1978_v2  ;;  %v2435_v9 = vld [vmem:[#allocation10 + $0x8] sm:$0xff]   ;;  %v2439_v10 = vld [vmem:[#allocation12 + $0x8] sm:$0xff]   ;;  %v1719_v12 = vld [vmem:[%s2800_s4] ss:$0 sm:$0xff]  ;;  %vm493_vm6 = vcmask 253952   ;;  %s2260_s0 = smov [#allocation14]  }
  0x5e   :  { %1819 = vmatprep.subr.bf16.mxu0 %v2254_v0  ;;  %1827 = vmatprep.subr.bf16.mxu1 %v2254_v0  ;;  %v1724_v13 = vld [vmem:[%s2804_s8] ss:$0 sm:$0xff]  ;;  %s1702_s25 = sshll.u32 %s2260_s0, 4  ;;  %s1703_s25 = int_to_ptr.vmem [resolvable:$true] %s1702_s25 }
  0x5f   :  { %v2487_v26 = vld [vmem:[%s2801_s5] ss:$0 sm:$0xff]  ;;  %s2257_s5 = smov 96  }
  0x60   :  { %v2492_v28 = vld [vmem:[%s2805_s9] ss:$0 sm:$0xff]  ;;  %s2259_s9 = smov [#allocation13]  }
  0x61   :  { %1820 = vmatpush3.bf16.msra.mxu0 %v1979_v3  ;;  %1828 = vmatpush3.bf16.msra.mxu1 %v1980_v4 }
  0x62   :  { %1833 = vmatprep.subr.bf16.mxu0 %v2254_v0  ;;  %1841 = vmatprep.subr.bf16.mxu1 %v2254_v0 }
  0x64   :  { %1822 = vmatmul.mubr.msk.bf16.vlgmr.msra.gmra.mrb[0].mxu0 %vm160_vm1, %v1981_v5  ;;  %1830 = vmatmul.mubr.msk.bf16.vlgmr.msra.gmra.mrb[0].mxu1 %vm160_vm1, %v1983_v7 }
  0x65   :  { %1834 = vmatpush3.bf16.msra.mxu0 %v2426_v6  ;;  %1842 = vmatpush3.bf16.msra.mxu1 %v2429_v8 }
  0x66   :  { %1835 = vmatprep.subr.bf16.mxu0 %v2254_v0  ;;  %1843 = vmatprep.subr.bf16.mxu1 %v2254_v0 }
  0x67   :  { %1837 = vmatprep.mubr.msk.bf16.mxu0 %vm2255_vm0, %v2254_v0  ;;  %1845 = vmatprep.mubr.msk.bf16.mxu1 %vm2255_vm0, %v2254_v0 }
  0x69   :  { %1836 = vmatpush3.bf16.msra.mxu0 %v2435_v9  ;;  %1844 = vmatpush3.bf16.msra.mxu1 %v2439_v10 }
  0x6a   :  { %1849 = vmatprep.subr.bf16.mxu0 %v2254_v0  ;;  %1857 = vmatprep.subr.bf16.mxu1 %v2254_v0 }
  0x6c   :  { %1838 = vmatmul.mubr.bf16.vlgmr.msra.gmra.mrb[4].mxu0 %v2256_v11  ;;  %1846 = vmatmul.mubr.bf16.vlgmr.msra.gmra.mrb[4].mxu1 %v2256_v11 }
  0x6d   :  { %1850 = vmatpush3.bf16.msra.mxu0 %v2426_v6  ;;  %1858 = vmatpush3.bf16.msra.mxu1 %v2429_v8 }
  0x6e   :  { %1851 = vmatprep.subr.bf16.mxu0 %v2254_v0  ;;  %1853 = vmatprep.mubr.msk.bf16.mxu0 %vm2255_vm0, %v2254_v0 }
  0x6f   :  { %1859 = vmatprep.subr.bf16.mxu1 %v2254_v0  ;;  %1861 = vmatprep.mubr.msk.bf16.mxu1 %vm2255_vm0, %v2254_v0 }
  0x71   :  { %1852 = vmatpush3.bf16.msra.mxu0 %v2435_v9  ;;  %1860 = vmatpush3.bf16.msra.mxu1 %v2439_v10 }
  0x72   :  { %1865 = vmatprep.subr.bf16.mxu0 %v2254_v0  ;;  %1873 = vmatprep.subr.bf16.mxu1 %v2254_v0 }
 0x137   :  { %v198_v14 = vpop.f32.mrb[0].mxu0  ;;  %v272_v17 = vpop.f32.mrb[0].mxu1 }
 0x138   :  { %v199_v15 = vadd.f32 %v1719_v12, %v198_v14  ;;  %v1823_v16 = vpop.f32.mrb[1].mxu0  ;;  %v273_v19 = vadd.f32 %v1724_v13, %v272_v17  ;;  %v1831_v20 = vpop.f32.mrb[1].mxu1 }
 0x139   :  { %v201_v18 = vpop.f32.mrb[2].mxu0  ;;  %v275_v23 = vpop.f32.mrb[2].mxu1 }
 0x13a   :  { %280 = vst.msk [vmem:[#allocation2] sm:$0x3] %vm279_vm2, %v199_v15  ;;  %v202_v21 = vadd.f32 %v1719_v12, %v201_v18  ;;  %v1824_v22 = vpop.f32.mrb[3].mxu0  ;;  %298 = vst.msk [vmem:[#allocation3] sm:$0x3] %vm279_vm2, %v273_v19  ;;  %v276_v24 = vadd.f32 %v1724_v13, %v275_v23  ;;  %v1832_v25 = vpop.f32.mrb[3].mxu1 }
 0x13b   :  { %283 = vst.msk [vmem:[#allocation2] sm:$0xc] %vm282_vm3, %v199_v15  ;;  %300 = vst.msk [vmem:[#allocation3] sm:$0xc] %vm282_vm3, %v273_v19 }
 0x13c   :  { %286 = vst.msk [vmem:[#allocation2] sm:$0x30] %vm285_vm4, %v199_v15  ;;  %302 = vst.msk [vmem:[#allocation3] sm:$0x30] %vm285_vm4, %v273_v19 }
 0x13d   :  { %289 = vst.msk [vmem:[#allocation2] sm:$0xc0] %vm288_vm5, %v199_v15  ;;  %304 = vst.msk [vmem:[#allocation3] sm:$0xc0] %vm288_vm5, %v273_v19 }
 0x13e   :  { %291 = vst.msk [vmem:[#allocation2 + $0x8] sm:$0x3] %vm279_vm2, %v202_v21  ;;  %306 = vst.msk [vmem:[#allocation3 + $0x8] sm:$0x3] %vm279_vm2, %v276_v24 }
 0x13f   :  { %293 = vst.msk [vmem:[#allocation2 + $0x8] sm:$0xc] %vm282_vm3, %v202_v21  ;;  %308 = vst.msk [vmem:[#allocation3 + $0x8] sm:$0xc] %vm282_vm3, %v276_v24  ;;  %v363_v27 = vpop.f32.mrb[4].mxu0  ;;  %v442_v31 = vpop.f32.mrb[4].mxu1 }
 0x140   :  { %295 = vst.msk [vmem:[#allocation2 + $0x8] sm:$0x30] %vm285_vm4, %v202_v21  ;;  %310 = vst.msk [vmem:[#allocation3 + $0x8] sm:$0x30] %vm285_vm4, %v276_v24  ;;  %v364_v29 = vadd.f32 %v2487_v26, %v363_v27  ;;  %v1839_v30 = vpop.f32.mrb[5].mxu0  ;;  %v1847_v33 = vpop.f32.mrb[5].mxu1  ;;  %v443_v34 = vadd.f32 %v2492_v28, %v442_v31 }
 0x141   :  { %297 = vst.msk [vmem:[#allocation2 + $0x8] sm:$0xc0] %vm288_vm5, %v202_v21  ;;  %312 = vst.msk [vmem:[#allocation3 + $0x8] sm:$0xc0] %vm288_vm5, %v276_v24  ;;  %v366_v32 = vpop.f32.mrb[6].mxu0  ;;  %v445_v36 = vpop.f32.mrb[6].mxu1 }
 0x142   :  { %377 = vrot.lane.b32.xlu0 %v364_v29, %s2249_s29  ;;  %v1840_v35 = vpop.f32.mrb[7].mxu0  ;;  %v1848_v37 = vpop.f32.mrb[7].mxu1  ;;  %v313_v38 = vld [vmem:[#allocation2] sm:$0x3]  ;;  %v395_v40 = vld [vmem:[#allocation3] sm:$0x3] }
 0x143   :  { %v369_v39 = vadd.f32 %v364_v29, %v313_v38  ;;  %v448_v42 = vadd.f32 %v443_v34, %v395_v40  ;;  %v495_v25 = vld [vmem:[#allocation2 + $0x2] sm:$0x3]  ;;  %v567_v29 = vld [vmem:[#allocation3 + $0x2] sm:$0x3] }
 0x145   :  { %v1731_v41 = vmul.f32 -1.442695, %v369_v39  ;;  %v1734_v43 = vmul.f32 -1.442695, %v448_v42 }
 0x146   :  { %456 = vrot.lane.b32.xlu0 %v443_v34, %s2249_s29 }
 0x147   :  { %1987 = vpow2.f32 %v1731_v41 }
 0x148   :  { %1989 = vpow2.f32 %v1734_v43 }
 0x151   :  { %v1988_v44 = vpop.eup %1987 }
 0x152   :  { %v373_v45 = vadd.f32 1.0, %v1988_v44  ;;  %v1990_v46 = vpop.eup %1989 }
 0x153   :  { %v452_v47 = vadd.f32 1.0, %v1990_v46 }
 0x154   :  { %1991 = vrcp.f32 %v373_v45 }
 0x155   :  { %1993 = vrcp.f32 %v452_v47 }
 0x15e   :  { %v1992_v48 = vpop.eup %1991 }
 0x15f   :  { %v1994_v51 = vpop.eup %1993  ;;  %v387_v60 = vsub.f32 1.0, %v1992_v48  ;;  %v393_v62 = vmul.f32 0.0, %v1992_v48 }
 0x160   :  { %v466_v2 = vsub.f32 1.0, %v1994_v51  ;;  %v472_v4 = vmul.f32 0.0, %v1994_v51 }
 0x1b4   :  { %v378_v49 = vpop.permute.xlu0 %377 }
 0x1b5   :  { %v380_v50 = vmul.f32 %v1992_v48, %v378_v49 }
 0x1b7   :  { %382 = vrot.lane.b32.xlu1 %v380_v50, %s2249_s29 }
 0x1b8   :  { %v457_v52 = vpop.permute.xlu0 %456 }
 0x1b9   :  { %v459_v53 = vmul.f32 %v1994_v51, %v457_v52 }
 0x1bb   :  { %461 = vrot.lane.b32.xlu1 %v459_v53, %s2249_s29 }
 0x229   :  { %v383_v54 = vpop.permute.xlu1 %382 }
 0x22a   :  { %v385_v55 = vadd.f32 %v383_v54, %v313_v38 }
 0x22c   :  { %1995 = vtanh.f32 %v385_v55 }
 0x22d   :  { %v462_v56 = vpop.permute.xlu1 %461 }
 0x22e   :  { %v464_v57 = vadd.f32 %v462_v56, %v395_v40 }
 0x230   :  { %1997 = vtanh.f32 %v464_v57 }
 0x236   :  { %v1996_v58 = vpop.eup %1995 }
 0x237   :  { %389 = vrot.lane.b32.xlu0 %v1996_v58, %s2257_s5 }
 0x23a   :  { %v1998_v59 = vpop.eup %1997 }
 0x23b   :  { %468 = vrot.lane.b32.xlu1 %v1998_v59, %s2257_s5 }
 0x2a9   :  { %v390_v61 = vpop.permute.xlu0 %389 }
 0x2aa   :  { %v392_v63 = vmul.f32 %v390_v61, %v387_v60 }
 0x2ac   :  { %v2502_v1 = vadd.f32 %v393_v62, %v392_v63 }
 0x2ad   :  { %v469_v3 = vpop.permute.xlu1 %468 }
 0x2ae   :  { %v471_v5 = vmul.f32 %v469_v3, %v466_v2  ;;  %v2506_v7 = vpack.c.bf16 %v2502_v1, %v2502_v1 }
 0x2b0   :  { %v2508_v11 = vadd.f32 %v472_v4, %v471_v5  ;;  %496 = vrot.lane.b32.xlu0 %v2506_v7, %s2257_s5 }
 0x2b2   :  { %v568_v12 = vpack.c.bf16 %v2508_v11, %v2508_v11 }
 0x2b4   :  { %570 = vrot.lane.b32.xlu1 %v568_v12, %s2257_s5 }
 0x322   :  { %v497_v13 = vpop.permute.xlu0 %496 }
 0x323   :  { %1854 = vmatmul.mubr.msk.bf16.vlgmr.msra.gmra.mrb[8].mxu0 %vm160_vm1, %v497_v13 }
 0x324   :  { %1866 = vmatpush3.bf16.msra.mxu0 %v2426_v6  ;;  %1869 = vmatprep.mubr.msk.bf16.mxu0 %vm2255_vm0, %v2254_v0 }
 0x325   :  { %1867 = vmatprep.subr.bf16.mxu0 %v2254_v0 }
 0x326   :  { %v571_v14 = vpop.permute.xlu1 %570 }
 0x327   :  { %1862 = vmatmul.mubr.msk.bf16.vlgmr.msra.gmra.mrb[8].mxu1 %vm160_vm1, %v571_v14 }
 0x328   :  { %1868 = vmatpush3.bf16.msra.mxu0 %v2435_v9  ;;  %1874 = vmatpush3.bf16.msra.mxu1 %v2429_v8 }
 0x329   :  { %1875 = vmatprep.subr.bf16.mxu1 %v2254_v0  ;;  %1877 = vmatprep.mubr.msk.bf16.mxu1 %vm2255_vm0, %v2254_v0 }
 0x32a   :  { %1881 = vmatprep.subr.bf16.mxu0 %v2254_v0 }
 0x32c   :  { %1876 = vmatpush3.bf16.msra.mxu1 %v2439_v10 }
 0x32d   :  { %1889 = vmatprep.subr.bf16.mxu1 %v2254_v0 }
 0x3f6   :  { %v535_v15 = vpop.f32.mrb[8].mxu0 }
 0x3f7   :  { %v536_v16 = vadd.f32 %v2487_v26, %v535_v15  ;;  %v1855_v17 = vpop.f32.mrb[9].mxu0  ;;  %v662_v15 = vld [vmem:[#allocation2 + $0x4] sm:$0x3] }
 0x3f8   :  { %v538_v18 = vpop.f32.mrb[10].mxu0  ;;  %v734_v17 = vld [vmem:[#allocation3 + $0x4] sm:$0x3] }
 0x3f9   :  { %549 = vrot.lane.b32.xlu0 %v536_v16, %s2249_s29  ;;  %v1856_v19 = vpop.f32.mrb[11].mxu0  ;;  %v541_v27 = vadd.f32 %v536_v16, %v495_v25 }
 0x3fa   :  { %v609_v20 = vpop.f32.mrb[8].mxu1 }
 0x3fb   :  { %v610_v21 = vadd.f32 %v2492_v28, %v609_v20  ;;  %v1863_v22 = vpop.f32.mrb[9].mxu1  ;;  %v1736_v30 = vmul.f32 -1.442695, %v541_v27 }
 0x3fc   :  { %v612_v23 = vpop.f32.mrb[10].mxu1 }
 0x3fd   :  { %623 = vrot.lane.b32.xlu1 %v610_v21, %s2249_s29  ;;  %v1864_v24 = vpop.f32.mrb[11].mxu1  ;;  %v615_v31 = vadd.f32 %v610_v21, %v567_v29  ;;  %1999 = vpow2.f32 %v1736_v30 }
 0x3ff   :  { %v1738_v32 = vmul.f32 -1.442695, %v615_v31 }
 0x401   :  { %2001 = vpow2.f32 %v1738_v32 }
 0x407   :  { %v2000_v33 = vpop.eup %1999 }
 0x408   :  { %v545_v34 = vadd.f32 1.0, %v2000_v33 }
 0x40a   :  { %2003 = vrcp.f32 %v545_v34 }
 0x40b   :  { %v2002_v35 = vpop.eup %2001 }
 0x40c   :  { %v619_v36 = vadd.f32 1.0, %v2002_v35 }
 0x40e   :  { %2005 = vrcp.f32 %v619_v36 }
 0x414   :  { %v2004_v37 = vpop.eup %2003 }
 0x415   :  { %v559_v49 = vsub.f32 1.0, %v2004_v37  ;;  %v565_v51 = vmul.f32 %v2004_v37, %v2502_v1 }
 0x418   :  { %v2006_v40 = vpop.eup %2005 }
 0x419   :  { %v633_v54 = vsub.f32 1.0, %v2006_v40  ;;  %v639_v56 = vmul.f32 %v2006_v40, %v2508_v11 }
 0x46b   :  { %v550_v38 = vpop.permute.xlu0 %549 }
 0x46c   :  { %v552_v39 = vmul.f32 %v2004_v37, %v550_v38 }
 0x46e   :  { %554 = vrot.lane.b32.xlu0 %v552_v39, %s2249_s29 }
 0x46f   :  { %v624_v41 = vpop.permute.xlu1 %623 }
 0x470   :  { %v626_v42 = vmul.f32 %v2006_v40, %v624_v41 }
 0x472   :  { %628 = vrot.lane.b32.xlu1 %v626_v42, %s2249_s29 }
 0x4e0   :  { %v555_v43 = vpop.permute.xlu0 %554 }
 0x4e1   :  { %v557_v44 = vadd.f32 %v555_v43, %v495_v25 }
 0x4e3   :  { %2007 = vtanh.f32 %v557_v44 }
 0x4e4   :  { %v629_v45 = vpop.permute.xlu1 %628 }
 0x4e5   :  { %v631_v46 = vadd.f32 %v629_v45, %v567_v29 }
 0x4e7   :  { %2009 = vtanh.f32 %v631_v46 }
 0x4ed   :  { %v2008_v47 = vpop.eup %2007 }
 0x4ee   :  { %561 = vrot.lane.b32.xlu0 %v2008_v47, %s2257_s5 }
 0x4f1   :  { %v2010_v48 = vpop.eup %2009 }
 0x4f2   :  { %635 = vrot.lane.b32.xlu1 %v2010_v48, %s2257_s5 }
 0x560   :  { %v562_v50 = vpop.permute.xlu0 %561 }
 0x561   :  { %v564_v52 = vmul.f32 %v562_v50, %v559_v49 }
 0x563   :  { %v2538_v53 = vadd.f32 %v565_v51, %v564_v52 }
 0x564   :  { %v636_v55 = vpop.permute.xlu1 %635 }
 0x565   :  { %v638_v57 = vmul.f32 %v636_v55, %v633_v54  ;;  %v2543_v58 = vpack.c.bf16 %v2538_v53, %v2538_v53 }
 0x567   :  { %v2545_v59 = vadd.f32 %v639_v56, %v638_v57  ;;  %663 = vrot.lane.b32.xlu0 %v2543_v58, %s2257_s5 }
 0x569   :  { %v735_v60 = vpack.c.bf16 %v2545_v59, %v2545_v59 }
 0x56b   :  { %737 = vrot.lane.b32.xlu1 %v735_v60, %s2257_s5 }
 0x5d9   :  { %v664_v61 = vpop.permute.xlu0 %663 }
 0x5da   :  { %1870 = vmatmul.mubr.msk.bf16.vlgmr.msra.gmra.mrb[12].mxu0 %vm160_vm1, %v664_v61 }
 0x5db   :  { %1882 = vmatpush3.bf16.msra.mxu0 %v2426_v6  ;;  %1885 = vmatprep.mubr.msk.bf16.mxu0 %vm2255_vm0, %v2254_v0 }
 0x5dc   :  { %1883 = vmatprep.subr.bf16.mxu0 %v2254_v0 }
 0x5dd   :  { %v738_v62 = vpop.permute.xlu1 %737 }
 0x5de   :  { %1878 = vmatmul.mubr.msk.bf16.vlgmr.msra.gmra.mrb[12].mxu1 %vm160_vm1, %v738_v62 }
 0x5df   :  { %1884 = vmatpush3.bf16.msra.mxu0 %v2435_v9  ;;  %1890 = vmatpush3.bf16.msra.mxu1 %v2429_v8 }
 0x5e0   :  { %1891 = vmatprep.subr.bf16.mxu1 %v2254_v0  ;;  %1893 = vmatprep.mubr.msk.bf16.mxu1 %vm2255_vm0, %v2254_v0 }
 0x5e1   :  { %1897 = vmatprep.subr.bf16.mxu0 %v2254_v0 }
 0x5e3   :  { %1892 = vmatpush3.bf16.msra.mxu1 %v2439_v10 }
 0x5e4   :  { %1905 = vmatprep.subr.bf16.mxu1 %v2254_v0 }
 0x6ad   :  { %v702_v63 = vpop.f32.mrb[12].mxu0 }
 0x6ae   :  { %v703_v1 = vadd.f32 %v2487_v26, %v702_v63  ;;  %v1871_v2 = vpop.f32.mrb[13].mxu0 }
 0x6af   :  { %v705_v3 = vpop.f32.mrb[14].mxu0 }
 0x6b0   :  { %716 = vrot.lane.b32.xlu0 %v703_v1, %s2249_s29  ;;  %v1872_v4 = vpop.f32.mrb[15].mxu0  ;;  %v708_v16 = vadd.f32 %v703_v1, %v662_v15  ;;  %v829_v1 = vld [vmem:[#allocation2 + $0x6] sm:$0x3]  ;;  %v901_v3 = vld [vmem:[#allocation3 + $0x6] sm:$0x3] }
 0x6b1   :  { %v776_v5 = vpop.f32.mrb[12].mxu1 }
 0x6b2   :  { %v777_v11 = vadd.f32 %v2492_v28, %v776_v5  ;;  %v1879_v12 = vpop.f32.mrb[13].mxu1  ;;  %v1740_v18 = vmul.f32 -1.442695, %v708_v16 }
 0x6b3   :  { %v779_v13 = vpop.f32.mrb[14].mxu1 }
 0x6b4   :  { %790 = vrot.lane.b32.xlu1 %v777_v11, %s2249_s29  ;;  %v1880_v14 = vpop.f32.mrb[15].mxu1  ;;  %v782_v19 = vadd.f32 %v777_v11, %v734_v17  ;;  %2011 = vpow2.f32 %v1740_v18 }
 0x6b6   :  { %v1742_v20 = vmul.f32 -1.442695, %v782_v19 }
 0x6b8   :  { %2013 = vpow2.f32 %v1742_v20 }
 0x6be   :  { %v2012_v21 = vpop.eup %2011 }
 0x6bf   :  { %v712_v22 = vadd.f32 1.0, %v2012_v21 }
 0x6c1   :  { %2015 = vrcp.f32 %v712_v22 }
 0x6c2   :  { %v2014_v23 = vpop.eup %2013 }
 0x6c3   :  { %v786_v24 = vadd.f32 1.0, %v2014_v23 }
 0x6c5   :  { %2017 = vrcp.f32 %v786_v24 }
 0x6cb   :  { %v2016_v25 = vpop.eup %2015 }
 0x6cc   :  { %v726_v39 = vsub.f32 1.0, %v2016_v25  ;;  %v732_v41 = vmul.f32 %v2016_v25, %v2538_v53 }
 0x6cf   :  { %v2018_v30 = vpop.eup %2017 }
 0x6d0   :  { %v800_v44 = vsub.f32 1.0, %v2018_v30  ;;  %v806_v46 = vmul.f32 %v2018_v30, %v2545_v59 }
 0x722   :  { %v717_v27 = vpop.permute.xlu0 %716 }
 0x723   :  { %v719_v29 = vmul.f32 %v2016_v25, %v717_v27 }
 0x725   :  { %721 = vrot.lane.b32.xlu0 %v719_v29, %s2249_s29 }
 0x726   :  { %v791_v31 = vpop.permute.xlu1 %790 }
 0x727   :  { %v793_v32 = vmul.f32 %v2018_v30, %v791_v31 }
 0x729   :  { %795 = vrot.lane.b32.xlu1 %v793_v32, %s2249_s29 }
 0x797   :  { %v722_v33 = vpop.permute.xlu0 %721 }
 0x798   :  { %v724_v34 = vadd.f32 %v722_v33, %v662_v15 }
 0x79a   :  { %2019 = vtanh.f32 %v724_v34 }
 0x79b   :  { %v796_v35 = vpop.permute.xlu1 %795 }
 0x79c   :  { %v798_v36 = vadd.f32 %v796_v35, %v734_v17 }
 0x79e   :  { %2021 = vtanh.f32 %v798_v36 }
 0x7a4   :  { %v2020_v37 = vpop.eup %2019 }
 0x7a5   :  { %728 = vrot.lane.b32.xlu0 %v2020_v37, %s2257_s5 }
 0x7a8   :  { %v2022_v38 = vpop.eup %2021 }
 0x7a9   :  { %802 = vrot.lane.b32.xlu1 %v2022_v38, %s2257_s5 }
 0x817   :  { %v729_v40 = vpop.permute.xlu0 %728 }
 0x818   :  { %v731_v42 = vmul.f32 %v729_v40, %v726_v39 }
 0x81a   :  { %v2575_v43 = vadd.f32 %v732_v41, %v731_v42 }
 0x81b   :  { %v803_v45 = vpop.permute.xlu1 %802 }
 0x81c   :  { %v805_v47 = vmul.f32 %v803_v45, %v800_v44  ;;  %v2580_v48 = vpack.c.bf16 %v2575_v43, %v2575_v43 }
 0x81e   :  { %v2582_v49 = vadd.f32 %v806_v46, %v805_v47  ;;  %830 = vrot.lane.b32.xlu0 %v2580_v48, %s2257_s5 }
 0x820   :  { %v902_v50 = vpack.c.bf16 %v2582_v49, %v2582_v49 }
 0x822   :  { %904 = vrot.lane.b32.xlu1 %v902_v50, %s2257_s5 }
 0x890   :  { %v831_v51 = vpop.permute.xlu0 %830 }
 0x891   :  { %1886 = vmatmul.mubr.msk.bf16.vlgmr.msra.gmra.mrb[16].mxu0 %vm160_vm1, %v831_v51 }
 0x892   :  { %1898 = vmatpush3.bf16.msra.mxu0 %v2426_v6  ;;  %1901 = vmatprep.mubr.msk.bf16.mxu0 %vm2255_vm0, %v2254_v0 }
 0x893   :  { %1899 = vmatprep.subr.bf16.mxu0 %v2254_v0 }
 0x894   :  { %v905_v52 = vpop.permute.xlu1 %904 }
 0x895   :  { %1894 = vmatmul.mubr.msk.bf16.vlgmr.msra.gmra.mrb[16].mxu1 %vm160_vm1, %v905_v52 }
 0x896   :  { %1900 = vmatpush3.bf16.msra.mxu0 %v2435_v9  ;;  %1906 = vmatpush3.bf16.msra.mxu1 %v2429_v8 }
 0x897   :  { %1907 = vmatprep.subr.bf16.mxu1 %v2254_v0  ;;  %1909 = vmatprep.mubr.msk.bf16.mxu1 %vm2255_vm0, %v2254_v0 }
 0x898   :  { %1913 = vmatprep.subr.bf16.mxu0 %v2254_v0 }
 0x89a   :  { %1908 = vmatpush3.bf16.msra.mxu1 %v2439_v10 }
 0x89b   :  { %1921 = vmatprep.subr.bf16.mxu1 %v2254_v0 }
 0x964   :  { %v869_v53 = vpop.f32.mrb[16].mxu0 }
 0x965   :  { %v870_v54 = vadd.f32 %v2487_v26, %v869_v53  ;;  %v1887_v55 = vpop.f32.mrb[17].mxu0 }
 0x966   :  { %v872_v56 = vpop.f32.mrb[18].mxu0  ;;  %v996_v55 = vld [vmem:[#allocation2 + $0x8] sm:$0x3] }
 0x967   :  { %883 = vrot.lane.b32.xlu0 %v870_v54, %s2249_s29  ;;  %v1888_v57 = vpop.f32.mrb[19].mxu0  ;;  %v875_v2 = vadd.f32 %v870_v54, %v829_v1 }
 0x968   :  { %v943_v59 = vpop.f32.mrb[16].mxu1  ;;  %v1068_v57 = vld [vmem:[#allocation3 + $0x8] sm:$0x3] }
 0x969   :  { %v944_v60 = vadd.f32 %v2492_v28, %v943_v59  ;;  %v1895_v61 = vpop.f32.mrb[17].mxu1  ;;  %v1744_v4 = vmul.f32 -1.442695, %v875_v2 }
 0x96a   :  { %v946_v62 = vpop.f32.mrb[18].mxu1 }
 0x96b   :  { %957 = vrot.lane.b32.xlu1 %v944_v60, %s2249_s29  ;;  %v1896_v63 = vpop.f32.mrb[19].mxu1  ;;  %v949_v5 = vadd.f32 %v944_v60, %v901_v3  ;;  %2023 = vpow2.f32 %v1744_v4 }
 0x96d   :  { %v1746_v11 = vmul.f32 -1.442695, %v949_v5 }
 0x96f   :  { %2025 = vpow2.f32 %v1746_v11 }
 0x975   :  { %v2024_v12 = vpop.eup %2023 }
 0x976   :  { %v879_v13 = vadd.f32 1.0, %v2024_v12 }
 0x978   :  { %2027 = vrcp.f32 %v879_v13 }
 0x979   :  { %v2026_v14 = vpop.eup %2025 }
 0x97a   :  { %v953_v15 = vadd.f32 1.0, %v2026_v14 }
 0x97c   :  { %2029 = vrcp.f32 %v953_v15 }
 0x982   :  { %v2028_v16 = vpop.eup %2027 }
 0x983   :  { %v893_v30 = vsub.f32 1.0, %v2028_v16  ;;  %v899_v32 = vmul.f32 %v2028_v16, %v2575_v43 }
 0x986   :  { %v2030_v19 = vpop.eup %2029 }
 0x987   :  { %v967_v35 = vsub.f32 1.0, %v2030_v19  ;;  %v973_v37 = vmul.f32 %v2030_v19, %v2582_v49 }
 0x9d9   :  { %v884_v17 = vpop.permute.xlu0 %883 }
 0x9da   :  { %v886_v18 = vmul.f32 %v2028_v16, %v884_v17 }
 0x9dc   :  { %888 = vrot.lane.b32.xlu0 %v886_v18, %s2249_s29 }
 0x9dd   :  { %v958_v20 = vpop.permute.xlu1 %957 }
 0x9de   :  { %v960_v21 = vmul.f32 %v2030_v19, %v958_v20 }
 0x9e0   :  { %962 = vrot.lane.b32.xlu1 %v960_v21, %s2249_s29 }
 0xa4e   :  { %v889_v22 = vpop.permute.xlu0 %888 }
 0xa4f   :  { %v891_v23 = vadd.f32 %v889_v22, %v829_v1 }
 0xa51   :  { %2031 = vtanh.f32 %v891_v23 }
 0xa52   :  { %v963_v24 = vpop.permute.xlu1 %962 }
 0xa53   :  { %v965_v25 = vadd.f32 %v963_v24, %v901_v3 }
 0xa55   :  { %2033 = vtanh.f32 %v965_v25 }
 0xa5b   :  { %v2032_v27 = vpop.eup %2031 }
 0xa5c   :  { %895 = vrot.lane.b32.xlu0 %v2032_v27, %s2257_s5 }
 0xa5f   :  { %v2034_v29 = vpop.eup %2033 }
 0xa60   :  { %969 = vrot.lane.b32.xlu1 %v2034_v29, %s2257_s5 }
 0xace   :  { %v896_v31 = vpop.permute.xlu0 %895 }
 0xacf   :  { %v898_v33 = vmul.f32 %v896_v31, %v893_v30 }
 0xad1   :  { %v2612_v34 = vadd.f32 %v899_v32, %v898_v33 }
 0xad2   :  { %v970_v36 = vpop.permute.xlu1 %969 }
 0xad3   :  { %v972_v38 = vmul.f32 %v970_v36, %v967_v35  ;;  %v2617_v39 = vpack.c.bf16 %v2612_v34, %v2612_v34 }
 0xad5   :  { %v2619_v40 = vadd.f32 %v973_v37, %v972_v38  ;;  %997 = vrot.lane.b32.xlu0 %v2617_v39, %s2257_s5 }
 0xad7   :  { %v1069_v41 = vpack.c.bf16 %v2619_v40, %v2619_v40 }
 0xad9   :  { %1071 = vrot.lane.b32.xlu1 %v1069_v41, %s2257_s5 }
 0xb47   :  { %v998_v42 = vpop.permute.xlu0 %997 }
 0xb48   :  { %1902 = vmatmul.mubr.msk.bf16.vlgmr.msra.gmra.mrb[20].mxu0 %vm160_vm1, %v998_v42 }
 0xb49   :  { %1914 = vmatpush3.bf16.msra.mxu0 %v2426_v6  ;;  %1917 = vmatprep.mubr.msk.bf16.mxu0 %vm2255_vm0, %v2254_v0 }
 0xb4a   :  { %1915 = vmatprep.subr.bf16.mxu0 %v2254_v0 }
 0xb4b   :  { %v1072_v43 = vpop.permute.xlu1 %1071 }
 0xb4c   :  { %1910 = vmatmul.mubr.msk.bf16.vlgmr.msra.gmra.mrb[20].mxu1 %vm160_vm1, %v1072_v43 }
 0xb4d   :  { %1916 = vmatpush3.bf16.msra.mxu0 %v2435_v9  ;;  %1922 = vmatpush3.bf16.msra.mxu1 %v2429_v8 }
 0xb4e   :  { %1923 = vmatprep.subr.bf16.mxu1 %v2254_v0  ;;  %1925 = vmatprep.mubr.msk.bf16.mxu1 %vm2255_vm0, %v2254_v0 }
 0xb4f   :  { %1929 = vmatprep.subr.bf16.mxu0 %v2254_v0 }
 0xb51   :  { %1924 = vmatpush3.bf16.msra.mxu1 %v2439_v10 }
 0xb52   :  { %1937 = vmatprep.subr.bf16.mxu1 %v2254_v0 }
 0xc1b   :  { %v1036_v44 = vpop.f32.mrb[20].mxu0 }
 0xc1c   :  { %v1037_v45 = vadd.f32 %v2487_v26, %v1036_v44  ;;  %v1903_v46 = vpop.f32.mrb[21].mxu0 }
 0xc1d   :  { %v1039_v47 = vpop.f32.mrb[22].mxu0 }
 0xc1e   :  { %1050 = vrot.lane.b32.xlu0 %v1037_v45, %s2249_s29  ;;  %v1904_v49 = vpop.f32.mrb[23].mxu0  ;;  %v1042_v56 = vadd.f32 %v1037_v45, %v996_v55  ;;  %v1163_v47 = vld [vmem:[#allocation2 + $0xa] sm:$0x3] }
 0xc1f   :  { %v1110_v50 = vpop.f32.mrb[20].mxu1 }
 0xc20   :  { %v1111_v51 = vadd.f32 %v2492_v28, %v1110_v50  ;;  %v1911_v52 = vpop.f32.mrb[21].mxu1  ;;  %v1748_v59 = vmul.f32 -1.442695, %v1042_v56  ;;  %v1235_v50 = vld [vmem:[#allocation3 + $0xa] sm:$0x3] }
 0xc21   :  { %v1113_v53 = vpop.f32.mrb[22].mxu1 }
 0xc22   :  { %1124 = vrot.lane.b32.xlu1 %v1111_v51, %s2249_s29  ;;  %v1912_v54 = vpop.f32.mrb[23].mxu1  ;;  %v1116_v60 = vadd.f32 %v1111_v51, %v1068_v57  ;;  %2035 = vpow2.f32 %v1748_v59 }
 0xc24   :  { %v1750_v61 = vmul.f32 -1.442695, %v1116_v60 }
 0xc26   :  { %2037 = vpow2.f32 %v1750_v61 }
 0xc2c   :  { %v2036_v62 = vpop.eup %2035 }
 0xc2d   :  { %v1046_v63 = vadd.f32 1.0, %v2036_v62 }
 0xc2f   :  { %2039 = vrcp.f32 %v1046_v63 }
 0xc30   :  { %v2038_v1 = vpop.eup %2037 }
 0xc31   :  { %v1120_v2 = vadd.f32 1.0, %v2038_v1 }
 0xc33   :  { %2041 = vrcp.f32 %v1120_v2 }
 0xc39   :  { %v2040_v3 = vpop.eup %2039 }
 0xc3a   :  { %v1060_v20 = vsub.f32 1.0, %v2040_v3  ;;  %v1066_v22 = vmul.f32 %v2040_v3, %v2612_v34 }
 0xc3d   :  { %v2042_v11 = vpop.eup %2041 }
 0xc3e   :  { %v1134_v25 = vsub.f32 1.0, %v2042_v11  ;;  %v1140_v29 = vmul.f32 %v2042_v11, %v2619_v40 }
 0xc90   :  { %v1051_v4 = vpop.permute.xlu0 %1050 }
 0xc91   :  { %v1053_v5 = vmul.f32 %v2040_v3, %v1051_v4 }
 0xc93   :  { %1055 = vrot.lane.b32.xlu0 %v1053_v5, %s2249_s29 }
 0xc94   :  { %v1125_v12 = vpop.permute.xlu1 %1124 }
 0xc95   :  { %v1127_v13 = vmul.f32 %v2042_v11, %v1125_v12 }
 0xc97   :  { %1129 = vrot.lane.b32.xlu1 %v1127_v13, %s2249_s29 }
 0xd05   :  { %v1056_v14 = vpop.permute.xlu0 %1055 }
 0xd06   :  { %v1058_v15 = vadd.f32 %v1056_v14, %v996_v55 }
 0xd08   :  { %2043 = vtanh.f32 %v1058_v15 }
 0xd09   :  { %v1130_v16 = vpop.permute.xlu1 %1129 }
 0xd0a   :  { %v1132_v17 = vadd.f32 %v1130_v16, %v1068_v57 }
 0xd0c   :  { %2045 = vtanh.f32 %v1132_v17 }
 0xd12   :  { %v2044_v18 = vpop.eup %2043 }
 0xd13   :  { %1062 = vrot.lane.b32.xlu0 %v2044_v18, %s2257_s5 }
 0xd16   :  { %v2046_v19 = vpop.eup %2045 }
 0xd17   :  { %1136 = vrot.lane.b32.xlu1 %v2046_v19, %s2257_s5 }
 0xd85   :  { %v1063_v21 = vpop.permute.xlu0 %1062 }
 0xd86   :  { %v1065_v23 = vmul.f32 %v1063_v21, %v1060_v20 }
 0xd88   :  { %v2649_v24 = vadd.f32 %v1066_v22, %v1065_v23 }
 0xd89   :  { %v1137_v27 = vpop.permute.xlu1 %1136 }
 0xd8a   :  { %v1139_v30 = vmul.f32 %v1137_v27, %v1134_v25  ;;  %v2654_v31 = vpack.c.bf16 %v2649_v24, %v2649_v24 }
 0xd8c   :  { %v2656_v32 = vadd.f32 %v1140_v29, %v1139_v30  ;;  %1164 = vrot.lane.b32.xlu0 %v2654_v31, %s2257_s5 }
 0xd8e   :  { %v1236_v33 = vpack.c.bf16 %v2656_v32, %v2656_v32 }
 0xd90   :  { %1238 = vrot.lane.b32.xlu1 %v1236_v33, %s2257_s5 }
 0xdfe   :  { %v1165_v34 = vpop.permute.xlu0 %1164 }
 0xdff   :  { %1918 = vmatmul.mubr.msk.bf16.vlgmr.msra.gmra.mrb[24].mxu0 %vm160_vm1, %v1165_v34 }
 0xe00   :  { %1930 = vmatpush3.bf16.msra.mxu0 %v2426_v6  ;;  %1933 = vmatprep.mubr.msk.bf16.mxu0 %vm2255_vm0, %v2254_v0 }
 0xe01   :  { %1931 = vmatprep.subr.bf16.mxu0 %v2254_v0 }
 0xe02   :  { %v1239_v35 = vpop.permute.xlu1 %1238 }
 0xe03   :  { %1926 = vmatmul.mubr.msk.bf16.vlgmr.msra.gmra.mrb[24].mxu1 %vm160_vm1, %v1239_v35 }
 0xe04   :  { %1932 = vmatpush3.bf16.msra.mxu0 %v2435_v9  ;;  %1938 = vmatpush3.bf16.msra.mxu1 %v2429_v8 }
 0xe05   :  { %1939 = vmatprep.subr.bf16.mxu1 %v2254_v0  ;;  %1941 = vmatprep.mubr.msk.bf16.mxu1 %vm2255_vm0, %v2254_v0 }
 0xe06   :  { %1945 = vmatprep.subr.bf16.mxu0 %v2254_v0 }
 0xe08   :  { %1940 = vmatpush3.bf16.msra.mxu1 %v2439_v10 }
 0xe09   :  { %1953 = vmatprep.subr.bf16.mxu1 %v2254_v0 }
 0xed2   :  { %v1203_v36 = vpop.f32.mrb[24].mxu0 }
 0xed3   :  { %v1204_v37 = vadd.f32 %v2487_v26, %v1203_v36  ;;  %v1919_v38 = vpop.f32.mrb[25].mxu0 }
 0xed4   :  { %v1206_v40 = vpop.f32.mrb[26].mxu0  ;;  %v1402_v38 = vld [vmem:[#allocation3 + $0xc] sm:$0x3] }
 0xed5   :  { %1217 = vrot.lane.b32.xlu0 %v1204_v37, %s2249_s29  ;;  %v1920_v41 = vpop.f32.mrb[27].mxu0  ;;  %v1209_v49 = vadd.f32 %v1204_v37, %v1163_v47  ;;  %v1330_v37 = vld [vmem:[#allocation2 + $0xc] sm:$0x3] }
 0xed6   :  { %v1277_v42 = vpop.f32.mrb[24].mxu1 }
 0xed7   :  { %v1278_v43 = vadd.f32 %v2492_v28, %v1277_v42  ;;  %v1927_v44 = vpop.f32.mrb[25].mxu1  ;;  %v1752_v51 = vmul.f32 -1.442695, %v1209_v49 }
 0xed8   :  { %v1280_v45 = vpop.f32.mrb[26].mxu1 }
 0xed9   :  { %1291 = vrot.lane.b32.xlu1 %v1278_v43, %s2249_s29  ;;  %v1928_v46 = vpop.f32.mrb[27].mxu1  ;;  %v1283_v52 = vadd.f32 %v1278_v43, %v1235_v50  ;;  %2047 = vpow2.f32 %v1752_v51 }
 0xedb   :  { %v1754_v53 = vmul.f32 -1.442695, %v1283_v52 }
 0xedd   :  { %2049 = vpow2.f32 %v1754_v53 }
 0xee3   :  { %v2048_v54 = vpop.eup %2047 }
 0xee4   :  { %v1213_v55 = vadd.f32 1.0, %v2048_v54 }
 0xee6   :  { %2051 = vrcp.f32 %v1213_v55 }
 0xee7   :  { %v2050_v56 = vpop.eup %2049 }
 0xee8   :  { %v1287_v57 = vadd.f32 1.0, %v2050_v56 }
 0xeea   :  { %2053 = vrcp.f32 %v1287_v57 }
 0xef0   :  { %v2052_v59 = vpop.eup %2051 }
 0xef1   :  { %v1227_v13 = vsub.f32 1.0, %v2052_v59  ;;  %v1233_v15 = vmul.f32 %v2052_v59, %v2649_v24 }
 0xef4   :  { %v2054_v62 = vpop.eup %2053 }
 0xef5   :  { %v1301_v18 = vsub.f32 1.0, %v2054_v62  ;;  %v1307_v20 = vmul.f32 %v2054_v62, %v2656_v32 }
 0xf47   :  { %v1218_v60 = vpop.permute.xlu0 %1217 }
 0xf48   :  { %v1220_v61 = vmul.f32 %v2052_v59, %v1218_v60 }
 0xf4a   :  { %1222 = vrot.lane.b32.xlu0 %v1220_v61, %s2249_s29 }
 0xf4b   :  { %v1292_v63 = vpop.permute.xlu1 %1291 }
 0xf4c   :  { %v1294_v1 = vmul.f32 %v2054_v62, %v1292_v63 }
 0xf4e   :  { %1296 = vrot.lane.b32.xlu1 %v1294_v1, %s2249_s29 }
 0xfbc   :  { %v1223_v2 = vpop.permute.xlu0 %1222 }
 0xfbd   :  { %v1225_v3 = vadd.f32 %v1223_v2, %v1163_v47 }
 0xfbf   :  { %2055 = vtanh.f32 %v1225_v3 }
 0xfc0   :  { %v1297_v4 = vpop.permute.xlu1 %1296 }
 0xfc1   :  { %v1299_v5 = vadd.f32 %v1297_v4, %v1235_v50 }
 0xfc3   :  { %2057 = vtanh.f32 %v1299_v5 }
 0xfc9   :  { %v2056_v11 = vpop.eup %2055 }
 0xfca   :  { %1229 = vrot.lane.b32.xlu0 %v2056_v11, %s2257_s5 }
 0xfcd   :  { %v2058_v12 = vpop.eup %2057 }
 0xfce   :  { %1303 = vrot.lane.b32.xlu1 %v2058_v12, %s2257_s5 }
0x103c   :  { %v1230_v14 = vpop.permute.xlu0 %1229 }
0x103d   :  { %v1232_v16 = vmul.f32 %v1230_v14, %v1227_v13 }
0x103f   :  { %v2686_v17 = vadd.f32 %v1233_v15, %v1232_v16 }
0x1040   :  { %v1304_v19 = vpop.permute.xlu1 %1303 }
0x1041   :  { %v1306_v21 = vmul.f32 %v1304_v19, %v1301_v18  ;;  %v2691_v22 = vpack.c.bf16 %v2686_v17, %v2686_v17 }
0x1043   :  { %v2693_v23 = vadd.f32 %v1307_v20, %v1306_v21  ;;  %1331 = vrot.lane.b32.xlu0 %v2691_v22, %s2257_s5 }
0x1045   :  { %v1403_v24 = vpack.c.bf16 %v2693_v23, %v2693_v23 }
0x1047   :  { %1405 = vrot.lane.b32.xlu1 %v1403_v24, %s2257_s5 }
0x10b5   :  { %v1332_v25 = vpop.permute.xlu0 %1331 }
0x10b6   :  { %1934 = vmatmul.mubr.msk.bf16.vlgmr.msra.gmra.mrb[28].mxu0 %vm160_vm1, %v1332_v25 }
0x10b7   :  { %1946 = vmatpush3.bf16.msra.mxu0 %v2426_v6  ;;  %1949 = vmatprep.mubr.msk.bf16.mxu0 %vm2255_vm0, %v2254_v0 }
0x10b8   :  { %1947 = vmatprep.subr.bf16.mxu0 %v2254_v0 }
0x10b9   :  { %v1406_v27 = vpop.permute.xlu1 %1405 }
0x10ba   :  { %1942 = vmatmul.mubr.msk.bf16.vlgmr.msra.gmra.mrb[28].mxu1 %vm160_vm1, %v1406_v27 }
0x10bb   :  { %1948 = vmatpush3.bf16.msra.mxu0 %v2435_v9  ;;  %1954 = vmatpush3.bf16.msra.mxu1 %v2429_v8 }
0x10bc   :  { %1955 = vmatprep.subr.bf16.mxu1 %v2254_v0  ;;  %1957 = vmatprep.mubr.msk.bf16.mxu1 %vm2255_vm0, %v2254_v0 }
0x10bf   :  { %1956 = vmatpush3.bf16.msra.mxu1 %v2439_v10 }
0x1189   :  { %v1370_v6 = vpop.f32.mrb[28].mxu0 }
0x118a   :  { %v1371_v29 = vadd.f32 %v2487_v26, %v1370_v6  ;;  %v1935_v30 = vpop.f32.mrb[29].mxu0  ;;  %v1497_v6 = vld [vmem:[#allocation2 + $0xe] sm:$0x3] }
0x118b   :  { %v1373_v32 = vpop.f32.mrb[30].mxu0  ;;  %v1569_v30 = vld [vmem:[#allocation3 + $0xe] sm:$0x3] }
0x118c   :  { %1384 = vrot.lane.b32.xlu0 %v1371_v29, %s2249_s29  ;;  %v1936_v33 = vpop.f32.mrb[31].mxu0  ;;  %v1376_v0 = vadd.f32 %v1371_v29, %v1330_v37 }
0x118d   :  { %v1444_v34 = vpop.f32.mrb[28].mxu1 }
0x118e   :  { %v1445_v9 = vadd.f32 %v2492_v28, %v1444_v34  ;;  %v1943_v35 = vpop.f32.mrb[29].mxu1  ;;  %v1756_v10 = vmul.f32 -1.442695, %v1376_v0 }
0x118f   :  { %v1447_v8 = vpop.f32.mrb[30].mxu1 }
0x1190   :  { %1458 = vrot.lane.b32.xlu1 %v1445_v9, %s2249_s29  ;;  %v1944_v36 = vpop.f32.mrb[31].mxu1  ;;  %v1450_v40 = vadd.f32 %v1445_v9, %v1402_v38  ;;  %2059 = vpow2.f32 %v1756_v10 }
0x1192   :  { %v1758_v41 = vmul.f32 -1.442695, %v1450_v40 }
0x1194   :  { %2061 = vpow2.f32 %v1758_v41  ;;  %v2258_v41 = vmov 1966171168  }
0x119a   :  { %v2060_v42 = vpop.eup %2059 }
0x119b   :  { %v1380_v43 = vadd.f32 1.0, %v2060_v42  ;;  %v477_v42 = vunpack.c.l.s4 %v2258_v41 }
0x119d   :  { %2063 = vrcp.f32 %v1380_v43  ;;  %v479_v43 = vlaneseq }
0x119e   :  { %v2062_v44 = vpop.eup %2061 }
0x119f   :  { %v1454_v45 = vadd.f32 1.0, %v2062_v44 }
0x11a1   :  { %2065 = vrcp.f32 %v1454_v45 }
0x11a7   :  { %v2064_v46 = vpop.eup %2063 }
0x11a8   :  { %v1394_v60 = vsub.f32 1.0, %v2064_v46  ;;  %v1400_v62 = vmul.f32 %v2064_v46, %v2686_v17 }
0x11ab   :  { %v2066_v50 = vpop.eup %2065 }
0x11ac   :  { %v1468_v2 = vsub.f32 1.0, %v2066_v50  ;;  %v1474_v4 = vmul.f32 %v2066_v50, %v2693_v23 }
0x11fe   :  { %v1385_v47 = vpop.permute.xlu0 %1384 }
0x11ff   :  { %v1387_v49 = vmul.f32 %v2064_v46, %v1385_v47  ;;  %v478_v46 = vunpack.c.0.s8 %v477_v42  ;;  %v480_v47 = vshrl.u32 %v479_v43, 7 }
0x1201   :  { %1389 = vrot.lane.b32.xlu0 %v1387_v49, %s2249_s29 }
0x1202   :  { %v1459_v51 = vpop.permute.xlu1 %1458 }
0x1203   :  { %v1461_v52 = vmul.f32 %v2066_v50, %v1459_v51  ;;  %v481_v50 = vsub.s32 %v478_v46, %v480_v47 }
0x1205   :  { %1463 = vrot.lane.b32.xlu1 %v1461_v52, %s2249_s29  ;;  %v482_v51 = vrot.slane %v2506_v7, %v481_v50 }
0x1273   :  { %v1390_v53 = vpop.permute.xlu0 %1389 }
0x1274   :  { %v1392_v54 = vadd.f32 %v1390_v53, %v1330_v37  ;;  %v489_v53 = vrot.slane %v482_v51, %v481_v50 }
0x1276   :  { %2067 = vtanh.f32 %v1392_v54  ;;  %v649_v54 = vrot.slane %v2543_v58, %v481_v50  ;;  %v1317_v58 = vrot.slane %v2691_v22, %v481_v50 }
0x1277   :  { %v1464_v55 = vpop.permute.xlu1 %1463 }
0x1278   :  { %v1466_v56 = vadd.f32 %v1464_v55, %v1402_v38  ;;  %v816_v55 = vrot.slane %v2580_v48, %v481_v50 }
0x127a   :  { %2069 = vtanh.f32 %v1466_v56 }
0x1280   :  { %v2068_v57 = vpop.eup %2067 }
0x1281   :  { %1396 = vrot.lane.b32.xlu0 %v2068_v57, %s2257_s5  ;;  %v656_v57 = vrot.slane %v649_v54, %v481_v50 }
0x1284   :  { %v2070_v59 = vpop.eup %2069 }
0x1285   :  { %1470 = vrot.lane.b32.xlu1 %v2070_v59, %s2257_s5  ;;  %v823_v59 = vrot.slane %v816_v55, %v481_v50 }
0x12f3   :  { %v1397_v61 = vpop.permute.xlu0 %1396 }
0x12f4   :  { %v1399_v63 = vmul.f32 %v1397_v61, %v1394_v60  ;;  %v983_v60 = vrot.slane %v2617_v39, %v481_v50  ;;  %v1150_v61 = vrot.slane %v2654_v31, %v481_v50 }
0x12f6   :  { %v2721_v1 = vadd.f32 %v1400_v62, %v1399_v63  ;;  %v990_v7 = vrot.slane %v983_v60, %v481_v50  ;;  %v1157_v62 = vrot.slane %v1150_v61, %v481_v50  ;;  %v1324_v63 = vrot.slane %v1317_v58, %v481_v50 }
0x12f7   :  { %v1471_v3 = vpop.permute.xlu1 %1470 }
0x12f8   :  { %v1473_v5 = vmul.f32 %v1471_v3, %v1468_v2  ;;  %v2726_v11 = vpack.c.bf16 %v2721_v1, %v2721_v1 }
0x12fa   :  { %v2728_v12 = vadd.f32 %v1474_v4, %v1473_v5  ;;  %1498 = vrot.lane.b32.xlu0 %v2726_v11, %s2257_s5  ;;  %v1484_v48 = vrot.slane %v2726_v11, %v481_v50 }
0x12fc   :  { %v1570_v13 = vpack.c.bf16 %v2728_v12, %v2728_v12  ;;  %v1491_v2 = vrot.slane %v1484_v48, %v481_v50 }
0x12fe   :  { %1572 = vrot.lane.b32.xlu1 %v1570_v13, %s2257_s5 }
0x136c   :  { %v1499_v14 = vpop.permute.xlu0 %1498 }
0x136d   :  { %1950 = vmatmul.mubr.msk.bf16.vlgmr.msra.gmra.mrb[32].mxu0 %vm160_vm1, %v1499_v14 }
0x1370   :  { %v1573_v15 = vpop.permute.xlu1 %1572 }
0x1371   :  { %1958 = vmatmul.mubr.msk.bf16.vlgmr.msra.gmra.mrb[32].mxu1 %vm160_vm1, %v1573_v15 }
0x1440   :  { %v1537_v16 = vpop.f32.mrb[32].mxu0 }
0x1441   :  { %v1538_v17 = vadd.f32 %v2487_v26, %v1537_v16  ;;  %v1951_v18 = vpop.f32.mrb[33].mxu0 }
0x1442   :  { %v1540_v19 = vpop.f32.mrb[34].mxu0 }
0x1443   :  { %1551 = vrot.lane.b32.xlu0 %v1538_v17, %s2249_s29  ;;  %v1952_v20 = vpop.f32.mrb[35].mxu0  ;;  %v1543_v29 = vadd.f32 %v1538_v17, %v1497_v6 }
0x1444   :  { %v1611_v21 = vpop.f32.mrb[32].mxu1 }
0x1445   :  { %v1612_v23 = vadd.f32 %v2492_v28, %v1611_v21  ;;  %v1959_v24 = vpop.f32.mrb[33].mxu1  ;;  %v1760_v32 = vmul.f32 -1.442695, %v1543_v29 }
0x1446   :  { %v1614_v25 = vpop.f32.mrb[34].mxu1 }
0x1447   :  { %1625 = vrot.lane.b32.xlu1 %v1612_v23, %s2249_s29  ;;  %v1960_v27 = vpop.f32.mrb[35].mxu1  ;;  %v1617_v33 = vadd.f32 %v1612_v23, %v1569_v30  ;;  %2071 = vpow2.f32 %v1760_v32 }
0x1449   :  { %v1762_v26 = vmul.f32 -1.442695, %v1617_v33 }
0x144b   :  { %2073 = vpow2.f32 %v1762_v26 }
0x1451   :  { %v2072_v34 = vpop.eup %2071 }
0x1452   :  { %v1547_v9 = vadd.f32 1.0, %v2072_v34 }
0x1454   :  { %2075 = vrcp.f32 %v1547_v9 }
0x1455   :  { %v2074_v35 = vpop.eup %2073 }
0x1456   :  { %v1621_v8 = vadd.f32 1.0, %v2074_v35 }
0x1458   :  { %2077 = vrcp.f32 %v1621_v8 }
0x145e   :  { %v2076_v28 = vpop.eup %2075 }
0x145f   :  { %v1561_v39 = vsub.f32 1.0, %v2076_v28  ;;  %v1567_v3 = vmul.f32 %v2076_v28, %v2721_v1 }
0x1462   :  { %v2078_v0 = vpop.eup %2077 }
0x1463   :  { %v1635_v22 = vsub.f32 1.0, %v2078_v0  ;;  %v1641_v15 = vmul.f32 %v2078_v0, %v2728_v12 }
0x14b5   :  { %v1552_v36 = vpop.permute.xlu0 %1551 }
0x14b6   :  { %v1554_v37 = vmul.f32 %v2076_v28, %v1552_v36 }
0x14b8   :  { %1556 = vrot.lane.b32.xlu0 %v1554_v37, %s2249_s29 }
0x14b9   :  { %v1626_v38 = vpop.permute.xlu1 %1625 }
0x14ba   :  { %v1628_v10 = vmul.f32 %v2078_v0, %v1626_v38 }
0x14bc   :  { %1630 = vrot.lane.b32.xlu1 %v1628_v10, %s2249_s29  ;;  %s1689_s29 = sshll.u32 %s2259_s9, 4  ;;  %s1690_s29 = int_to_ptr.vmem [resolvable:$true] %s1689_s29 }
0x14bd   :  { %s2193_s12 = scalar_lea.vmem %s1690_s29, 128  ;;  %p2198_p13 = scmp.lt.s32.totalorder %s1690_s29, %s1690_s29 }
0x14be   :  { %p2194_p12 = scmp.ne.s32.totalorder %s1690_s29, %s2193_s12  ;;  %p2199_p0 = scmp.lt.s32.totalorder %s2193_s12, %s2193_s12 }
0x14c0   :  { %p2200_p1 = por %p2199_p0, %p2198_p13 }
0x14c2   :  { %p2201_p2 = pnand %p2200_p1, %p2194_p12 }
0x152a   :  { %v1557_v40 = vpop.permute.xlu0 %1556 }
0x152b   :  { %v1559_v44 = vadd.f32 %v1557_v40, %v1497_v6 }
0x152d   :  { %2079 = vtanh.f32 %v1559_v44 }
0x152e   :  { %v1631_v45 = vpop.permute.xlu1 %1630 }
0x152f   :  { %v1633_v49 = vadd.f32 %v1631_v45, %v1569_v30 }
0x1531   :  { %2081 = vtanh.f32 %v1633_v49 }
0x1537   :  { %v2080_v52 = vpop.eup %2079 }
0x1538   :  { %1563 = vrot.lane.b32.xlu0 %v2080_v52, %s2257_s5 }
0x153b   :  { %v2082_v56 = vpop.eup %2081 }
0x153c   :  { %1637 = vrot.lane.b32.xlu1 %v2082_v56, %s2257_s5  ;;  %490 = vrot.lane.b32.xlu0 %v489_v53, %s2257_s5 }
0x1540   :  { %657 = vrot.lane.b32.xlu1 %v656_v57, %s2257_s5  ;;  %824 = vrot.lane.b32.xlu0 %v823_v59, %s2257_s5 }
0x1544   :  { %991 = vrot.lane.b32.xlu1 %v990_v7, %s2257_s5  ;;  %1158 = vrot.lane.b32.xlu0 %v1157_v62, %s2257_s5 }
0x1548   :  { %1325 = vrot.lane.b32.xlu1 %v1324_v63, %s2257_s5  ;;  %1492 = vrot.lane.b32.xlu0 %v1491_v2, %s2257_s5 }
0x15aa   :  { %v1564_v31 = vpop.permute.xlu0 %1563 }
0x15ab   :  { %v1566_v4 = vmul.f32 %v1564_v31, %v1561_v39 }
0x15ad   :  { %v1568_v5 = vadd.f32 %v1567_v3, %v1566_v4 }
0x15ae   :  { %v1638_v13 = vpop.permute.xlu1 %1637  ;;  %v491_v11 = vpop.permute.xlu0 %490 }
0x15af   :  { %v1643_v14 = vpack.c.bf16 %v1568_v5, %v1568_v5  ;;  %v1640_v16 = vmul.f32 %v1638_v13, %v1635_v22  ;;  %494 = vst.msk [vmem:[#allocation13] sm:$0x1] %vm493_vm6, %v491_v11 }
0x15b1   :  { %v1651_v17 = vrot.slane %v1643_v14, %v481_v50  ;;  %v1642_v18 = vadd.f32 %v1641_v15, %v1640_v16 }
0x15b2   :  { %v658_v19 = vpop.permute.xlu1 %657  ;;  %v825_v20 = vpop.permute.xlu0 %824 }
0x15b3   :  { %v1664_v21 = vpack.c.bf16 %v1642_v18, %v1642_v18  ;;  %661 = vst.msk [vmem:[#allocation13 + $0x1] sm:$0x1] %vm493_vm6, %v658_v19  ;;  %828 = vst.msk [vmem:[#allocation13 + $0x2] sm:$0x1] %vm493_vm6, %v825_v20  ;;  %v1658_v1 = vrot.slane %v1651_v17, %v481_v50 }
0x15b5   :  { %v1672_v23 = vrot.slane %v1664_v21, %v481_v50  ;;  %1659 = vrot.lane.b32.xlu1 %v1658_v1, %s2257_s5 }
0x15b6   :  { %v992_v24 = vpop.permute.xlu1 %991  ;;  %v1159_v25 = vpop.permute.xlu0 %1158 }
0x15b7   :  { %995 = vst.msk [vmem:[#allocation13 + $0x3] sm:$0x1] %vm493_vm6, %v992_v24  ;;  %1162 = vst.msk [vmem:[#allocation13 + $0x4] sm:$0x1] %vm493_vm6, %v1159_v25  ;;  %v1679_v12 = vrot.slane %v1672_v23, %v481_v50 }
0x15b9   :  { %1680 = vrot.lane.b32.xlu0 %v1679_v12, %s2257_s5 }
0x15ba   :  { %v1326_v27 = vpop.permute.xlu1 %1325  ;;  %v1493_v6 = vpop.permute.xlu0 %1492 }
0x15bb   :  { %1329 = vst.msk [vmem:[#allocation13 + $0x5] sm:$0x1] %vm493_vm6, %v1326_v27  ;;  %1496 = vst.msk [vmem:[#allocation13 + $0x6] sm:$0x1] %vm493_vm6, %v1493_v6 }
0x1627   :  { %v1660_v29 = vpop.permute.xlu1 %1659 }
0x1628   :  { %1663 = vst.msk [vmem:[#allocation13 + $0x7] sm:$0x1] %vm493_vm6, %v1660_v29 }
0x1629   :  { %2204 = shalt.err (!%p2201_p2)
}
0x162a   :  { %s2205_s15 = scalar_lea.hbm %s2806_s10, 128 }
0x162b   :  { %p2206_p3 = scmp.ne.s32.totalorder %s2806_s10, %s2205_s15  ;;  %p2209_p4 = scmp.lt.u32.totalorder %s2205_s15, %s2806_s10 }
0x162d   :  { %p2211_p5 = pnand %p2209_p4, %p2206_p3 }
0x162f   :  { %2214 = shalt.err (!%p2211_p5)
}
0x1630   :  { %s2261_s19 = smov 16   ;;  %s2262_s21 = smov 1   ;;  %v1681_v30 = vpop.permute.xlu0 %1680 }
0x1631   :  { %1695 = dma.vmem_to_hbm [thread:$0]  %s1690_s29, 128, %s2806_s10, [#allocation6], %s2261_s19, %s2261_s19, %s2262_s21   ;;  %1683 = vst.msk [vmem:[#allocation14] sm:$0x1] %vm493_vm6, %v1681_v30 }
0x1632   :  { %s2215_s7 = scalar_lea.vmem %s1703_s25, 16  ;;  %s2219_s30 = scalar_lea.vmem %s1703_s25, 32 }
0x1633   :  { %p2216_p6 = scmp.ne.s32.totalorder %s1703_s25, %s2215_s7  ;;  %p2220_p7 = scmp.lt.s32.totalorder %s1703_s25, %s1703_s25 }
0x1634   :  { %p2221_p8 = scmp.lt.s32.totalorder %s2219_s30, %s2215_s7 }
0x1636   :  { %p2222_p9 = por %p2221_p8, %p2220_p7 }
0x1638   :  { %p2223_p10 = pnand %p2222_p9, %p2216_p6 }
0x163a   :  { %2226 = shalt.err (!%p2223_p10)
}
0x163b   :  { %s2227_s6 = scalar_lea.hbm %s2807_s11, 16 }
0x163c   :  { %p2228_p11 = scmp.ne.s32.totalorder %s2807_s11, %s2227_s6  ;;  %p2231_p12 = scmp.lt.u32.totalorder %s2227_s6, %s2807_s11 }
0x163e   :  { %p2233_p13 = pnand %p2231_p12, %p2228_p11 }
0x1640   :  { %2236 = shalt.err (!%p2233_p13)
}
0x1641   :  { %1705 = dma.vmem_to_hbm [thread:$0]  %s1703_s25, 16, %s2807_s11, [#allocation15]  }
0x1642   :  { %2243 = dma.done.wait [#allocation6], 128  }
0x1643   :  { %2244 = vsyncadd [#allocation6], 4294967168 }
0x1644   :  { %2245 = dma.done.wait [#allocation15], 16  }
0x1645   :  { %2246 = vsyncadd [#allocation15], 4294967280 }
0x1646   :  { %1712 = vsyncpa [#allocation5], 1 }
0x1647   :  { %1713 = vsyncpa [#allocation8], 1 }
0x1648   :  { %1714 = vsyncpa [#allocation11], 1 }
0x1649   :  { %1715 = vsyncpa [#allocation6], 1 }
0x164a   :  { %1716 = vsyncpa [#allocation15], 1 }

</bundles_post_ra>
